<compile_context>
chip_gen: v7x
topology: tpu7x:2x2x1
jax: 0.10.0
libtpu: 0.0.40
codegen_flags: <defaults>
</compile_context>

<pallas_src>
import functools

import jax
import jax.numpy as jnp
from jax.experimental import pallas as pl
from jax.experimental.pallas import tpu as pltpu

EPS = 1e-5  # torch.nn.LayerNorm default


def _round_up(x, m):
    return (x + m - 1) // m * m


def decoder_block_kernel(
    x_ref,                      # (ROWS, Ep) f32   ROWS = TILE_B * S   (pipelined tile)
    ln1_w_ref, ln1_b_ref,       # (1, Ep) f32      (resident)
    qkv_w_ref, qkv_b_ref,       # (Ep, 3Ep) cdt, (1, 3Ep) f32
    o_w_ref, o_b_ref,           # (Ep, Ep)  cdt, (1, Ep)  f32
    gu_w_ref, gu_b_ref,         # (Ep, 2Ep) cdt, (1, 2Ep) f32
    down_w_ref, down_b_ref,     # (Ep, Ep)  cdt, (1, Ep)  f32
    ln2_w_ref, ln2_b_ref,       # (1, Ep) f32
    head_mask_ref,              # (Ep, Ep) f32   block-diagonal same-head mask
    out_ref,                    # (ROWS, Ep) f32
    *, tile_b, seq_len, true_e,
):
    f32 = jnp.float32
    x = x_ref[...]
    rows, e_pad = x.shape
    cdt = qkv_w_ref.dtype               # matmul operand dtype (bf16 fast path or f32)
    inv_n = 1.0 / true_e

    # Column mask: 1 for real embedding columns, 0 for lane padding (built once).
    col = jax.lax.broadcasted_iota(jnp.int32, (1, e_pad), 1)
    col_mask = (col < true_e).astype(f32)

    def layernorm(z, w, b):
        # Padded columns of z are exact zeros, so sum(z)/true_E is the true mean;
        # the mask keeps the (0 - mean)^2 pad terms out of the variance.
        mean = jnp.sum(z, axis=-1, keepdims=True) * inv_n
        c = z - mean
        var = jnp.sum((c * c) * col_mask, axis=-1, keepdims=True) * inv_n
        return c * jax.lax.rsqrt(var + EPS) * w + b

    # ---- input LayerNorm (f32) ----
    h = layernorm(x, ln1_w_ref[...], ln1_b_ref[...])

    # ---- fused q/k/v projection: one (ROWS, Ep) @ (Ep, 3Ep) MXU matmul, f32 accum ----
    qkv = jnp.dot(h.astype(cdt), qkv_w_ref[...],
                  preferred_element_type=f32) + qkv_b_ref[...]          # (ROWS, 3Ep) f32

    # 128-aligned column slices (no cross-vreg shuffles); split rows into batches.
    q3 = qkv[:, :e_pad].reshape(tile_b, seq_len, e_pad)                 # (tb, S, Ep)
    k3 = qkv[:, e_pad:2 * e_pad].reshape(tile_b, seq_len, e_pad)
    v3 = qkv[:, 2 * e_pad:].reshape(tile_b, seq_len, e_pad)

    # ---- multi-head attention (no softmax / scaling, as in the reference) ----
    # Linear-attention identity: concat_h Q_h (K_h^T V_h) == Q @ (head_mask * (K^T V)),
    # so no per-head slicing and no (S,S) score matrix; everything stays on Ep lanes.
    # Minor-dim swap kept in f32 for portable XLU lowering (tiny: tb*S*Ep elements).
    kT = jnp.swapaxes(k3, 1, 2)                                          # (tb, Ep, S)
    ktv = jnp.einsum('bes,bsf->bef', kT.astype(cdt), v3.astype(cdt),
                     preferred_element_type=f32)                         # (tb, Ep, Ep) f32
    ktv = ktv * head_mask_ref[...]              # zero cross-head blocks; keep f32
    # Keep K^T V in f32 for the second contraction (it is a sum over S terms).
    attn = jnp.einsum('bse,bef->bsf', q3, ktv,
                      preferred_element_type=f32)                        # (tb, S, Ep) f32
    attn = attn.reshape(rows, e_pad)

    attn = jnp.dot(attn.astype(cdt), o_w_ref[...],
                   preferred_element_type=f32) + o_b_ref[...]            # o_proj

    # ---- MLP: gate(x) + down(up(x)); gate/up fused into one (Ep, 2Ep) matmul ----
    gu = jnp.dot(attn.astype(cdt), gu_w_ref[...],
                 preferred_element_type=f32) + gu_b_ref[...]             # (ROWS, 2Ep)
    y0 = gu[:, :e_pad]                                                   # gate branch
    y1 = jnp.dot(gu[:, e_pad:].astype(cdt), down_w_ref[...],
                 preferred_element_type=f32) + down_b_ref[...]           # down(up(x))
    m = y0 + y1

    # ---- post-attention LayerNorm (f32) ----
    out_ref[...] = layernorm(m, ln2_w_ref[...], ln2_b_ref[...])


def _pick_tile_b(batch, seq_len, e_pad, resident_bytes, budget_bytes):
    """Largest batch-group per grid step whose working set fits the VMEM budget
    (row count capped around 1024 per the HBM-roofline tiling guidance)."""
    best = 1
    for tb in range(1, batch + 1):
        if batch % tb:
            continue
        rows = tb * seq_len
        need = (resident_bytes
                + 4 * rows * e_pad * 4        # double-buffered x / out tiles (f32)
                + 10 * rows * e_pad * 4       # in-kernel f32 intermediates (qkv, attn, gu, ...)
                + tb * e_pad * e_pad * 4)     # per-batch K^T V blocks
        if rows <= 1024 and need <= budget_bytes:
            best = tb
    return best


def fake_decoder_block(x, params, *, head_num, matmul_dtype=jnp.bfloat16, tile_b=None):
    B, S, E = x.shape
    M = B * S
    hd = E // head_num
    f32 = jnp.float32
    cdt = matmul_dtype

    # Lane-dense embedding axis: pad E up to a multiple of 128 (no-op for real E).
    Ep = _round_up(max(E, 128), 128)

    def pad_w(w):   # (E, E) -> (Ep, Ep) zero pad (in, out) layout
        return jnp.pad(w, ((0, Ep - w.shape[0]), (0, Ep - w.shape[1])))

    def pad_b(b):   # (1, E) -> (1, Ep)
        return jnp.pad(b, ((0, 0), (0, Ep - b.shape[1])))

    x2 = jnp.pad(x.reshape(M, E).astype(f32), ((0, 0), (0, Ep - E)))

    # Host-side one-time weight fusion (q/k/v and gate/up concatenated on the out axis).
    qkv_w = jnp.concatenate([pad_w(params["q_w"]), pad_w(params["k_w"]),
                             pad_w(params["v_w"])], axis=1).astype(cdt)
    qkv_b = jnp.concatenate([pad_b(params["q_b"]), pad_b(params["k_b"]),
                             pad_b(params["v_b"])], axis=1).astype(f32)
    gu_w = jnp.concatenate([pad_w(params["gate_w"]), pad_w(params["up_w"])], axis=1).astype(cdt)
    gu_b = jnp.concatenate([pad_b(params["gate_b"]), pad_b(params["up_b"])], axis=1).astype(f32)
    o_w = pad_w(params["o_w"]).astype(cdt)
    o_b = pad_b(params["o_b"]).astype(f32)
    down_w = pad_w(params["down_w"]).astype(cdt)
    down_b = pad_b(params["down_b"]).astype(f32)
    ln1_w = pad_b(params["ln1_w"]).astype(f32)   # padded gamma/beta are zero -> pad cols stay 0
    ln1_b = pad_b(params["ln1_b"]).astype(f32)
    ln2_w = pad_b(params["ln2_w"]).astype(f32)
    ln2_b = pad_b(params["ln2_b"]).astype(f32)

    # Block-diagonal head mask (1 where row & column belong to the same head).
    head_ids = jnp.arange(Ep, dtype=jnp.int32) // hd
    head_mask = (head_ids[:, None] == head_ids[None, :]).astype(f32)

    # Per-generation VMEM budget with ~25% headroom for compiler scratch
    # (v5e/v6e: 128 MiB -> 96 MiB; v7x: 64 MiB -> 48 MiB).
    try:
        vmem_cap = int(pltpu.get_tpu_info().vmem_capacity_bytes)
    except Exception:
        vmem_cap = 64 * 1024 * 1024          # conservative fallback (v7x per-core VMEM)
    vmem_limit = int(max(16 << 20, (vmem_cap * 3) // 4))

    itemsize_w = jnp.dtype(cdt).itemsize
    resident = ((qkv_w.size + o_w.size + gu_w.size + down_w.size) * itemsize_w
                + (qkv_b.size + o_b.size + gu_b.size + down_b.size) * 4
                + 8 * Ep * 4 + head_mask.size * 4)

    if tile_b is None:
        tile_b = _pick_tile_b(B, S, Ep, resident, vmem_limit)
    if (tile_b * S) % 8 != 0:
        tile_b = B                            # full-array block is always layout-legal
    assert B % tile_b == 0
    rows = tile_b * S
    num_tiles = B // tile_b

    kernel = functools.partial(decoder_block_kernel,
                               tile_b=tile_b, seq_len=S, true_e=E)

    def resident_spec(shape):
        # Constant index_map: same block every grid step -> DMA'd once, stays
        # VMEM-resident for the whole grid.
        return pl.BlockSpec(shape, lambda i: (0, 0))

    out2 = pl.pallas_call(
        kernel,
        out_shape=jax.ShapeDtypeStruct((M, Ep), f32),
        grid=(num_tiles,),
        in_specs=[
            pl.BlockSpec((rows, Ep), lambda i: (i, 0)),      # x tile (pipelined)
            resident_spec((1, Ep)), resident_spec((1, Ep)),          # ln1 w/b
            resident_spec((Ep, 3 * Ep)), resident_spec((1, 3 * Ep)), # qkv w/b
            resident_spec((Ep, Ep)), resident_spec((1, Ep)),         # o w/b
            resident_spec((Ep, 2 * Ep)), resident_spec((1, 2 * Ep)), # gate/up w/b
            resident_spec((Ep, Ep)), resident_spec((1, Ep)),         # down w/b
            resident_spec((1, Ep)), resident_spec((1, Ep)),          # ln2 w/b
            resident_spec((Ep, Ep)),                                 # head mask
        ],
        out_specs=pl.BlockSpec((rows, Ep), lambda i: (i, 0)),
        compiler_params=pltpu.CompilerParams(
            dimension_semantics=("parallel",),   # independent batch tiles; uses both v7x TCs
            vmem_limit_bytes=vmem_limit),
    )(x2, ln1_w, ln1_b, qkv_w, qkv_b, o_w, o_b, gu_w, gu_b,
      down_w, down_b, ln2_w, ln2_b, head_mask)

    return out2[:, :E].reshape(B, S, E)


def reference_forward(x, params, *, head_num):
    """Pure-JAX f32 mirror of the PyTorch module (semantic ground truth)."""
    def ln(z, w, b):
        mean = z.mean(-1, keepdims=True)
        var = ((z - mean) ** 2).mean(-1, keepdims=True)
        return (z - mean) / jnp.sqrt(var + EPS) * w[0] + b[0]

    B, S, E = x.shape
    hd = E // head_num

    h = ln(x, params["ln1_w"], params["ln1_b"])
    q = h @ params["q_w"] + params["q_b"][0]
    k = h @ params["k_w"] + params["k_b"][0]
    v = h @ params["v_w"] + params["v_b"][0]

    q = q.reshape(B, S, head_num, hd).transpose(0, 2, 1, 3)   # (B,H,S,hd)
    k = k.reshape(B, S, head_num, hd).transpose(0, 2, 3, 1)   # (B,H,hd,S)
    v = v.reshape(B, S, head_num, hd).transpose(0, 2, 1, 3)   # (B,H,S,hd)
    qk = jnp.matmul(q, k)                                     # (B,H,S,S)
    qkv = jnp.matmul(qk, v).transpose(0, 2, 1, 3).reshape(B, S, E)
    attn = qkv @ params["o_w"] + params["o_b"][0]

    y0 = attn @ params["gate_w"] + params["gate_b"][0]
    y1 = attn @ params["up_w"] + params["up_b"][0]
    y1 = y1 @ params["down_w"] + params["down_b"][0]
    m = y0 + y1

    return ln(m, params["ln2_w"], params["ln2_b"])


def init_params(key, emb_dim):
    keys = jax.random.split(key, 14)

    def w(k):   # (in, out) weight (PyTorch nn.Linear stores (out, in); pre-transposed here)
        return jax.random.normal(k, (emb_dim, emb_dim), jnp.float32) * 0.05

    def b(k):   # bias stored as (1, E) for clean VMEM layout
        return jax.random.normal(k, (1, emb_dim), jnp.float32) * 0.05

    return {
        "ln1_w": jnp.ones((1, emb_dim), jnp.float32),
        "ln1_b": jnp.zeros((1, emb_dim), jnp.float32),
        "q_w": w(keys[0]),    "q_b": b(keys[1]),
        "k_w": w(keys[2]),    "k_b": b(keys[3]),
        "v_w": w(keys[4]),    "v_b": b(keys[5]),
        "o_w": w(keys[6]),    "o_b": b(keys[7]),
        "gate_w": w(keys[8]), "gate_b": b(keys[9]),
        "up_w": w(keys[10]),  "up_b": b(keys[11]),
        "down_w": w(keys[12]), "down_b": b(keys[13]),
        "ln2_w": jnp.ones((1, emb_dim), jnp.float32),
        "ln2_b": jnp.zeros((1, emb_dim), jnp.float32),
    }


if __name__ == "__main__":
    BATCH, SEQ_LEN, HEAD_NUM, EMB_DIM = 2, 8, 4, 32

    key = jax.random.PRNGKey(0)
    k_x, k_p = jax.random.split(key)
    x = jax.random.normal(k_x, (BATCH, SEQ_LEN, EMB_DIM), jnp.float32)
    params = init_params(k_p, EMB_DIM)

    ref = reference_forward(x, params, head_num=HEAD_NUM)

    # 1) Exact-semantics check: f32 matmul path vs. the torch-faithful f32 reference.
    out_f32 = jax.block_until_ready(
        fake_decoder_block(x, params, head_num=HEAD_NUM, matmul_dtype=jnp.float32))
    assert out_f32.shape == (BATCH, SEQ_LEN, EMB_DIM)
    assert jnp.allclose(out_f32, ref, atol=5e-4, rtol=5e-4), "f32 kernel mismatch vs reference"

    # 2) Fast path: bf16 MXU operands, f32 accumulation, K^T V kept in f32
    #    (tolerance tightened vs. the previous 0.25 since the intermediate no
    #     longer round-trips through bf16).
    out_bf16 = jax.block_until_ready(
        fake_decoder_block(x, params, head_num=HEAD_NUM, matmul_dtype=jnp.bfloat16))
    err = float(jnp.max(jnp.abs(out_bf16 - ref)))
    assert err < 0.12, f"bf16 kernel diverged from reference: max abs err {err}"

    print("KERNEL_OK")
</pallas_src>

<mosaic_0001>
module attributes {stable_mosaic.version = 11 : i64} {
  func.func @decoder_block_kernel(%arg0: i32, %arg1: memref<16x128xf32, #tpu.memory_space<vmem>>, %arg2: memref<1x128xf32, #tpu.memory_space<vmem>>, %arg3: memref<1x128xf32, #tpu.memory_space<vmem>>, %arg4: memref<128x384xf32, #tpu.memory_space<vmem>>, %arg5: memref<1x384xf32, #tpu.memory_space<vmem>>, %arg6: memref<128x128xf32, #tpu.memory_space<vmem>>, %arg7: memref<1x128xf32, #tpu.memory_space<vmem>>, %arg8: memref<128x256xf32, #tpu.memory_space<vmem>>, %arg9: memref<1x256xf32, #tpu.memory_space<vmem>>, %arg10: memref<128x128xf32, #tpu.memory_space<vmem>>, %arg11: memref<1x128xf32, #tpu.memory_space<vmem>>, %arg12: memref<1x128xf32, #tpu.memory_space<vmem>>, %arg13: memref<1x128xf32, #tpu.memory_space<vmem>>, %arg14: memref<128x128xf32, #tpu.memory_space<vmem>>, %arg15: memref<16x128xf32, #tpu.memory_space<vmem>>) attributes {dimension_semantics = [#tpu.dimension_semantics<parallel>], iteration_bounds = array<i64: 1>, scalar_prefetch = 0 : i64, scratch_operands = 0 : i64, tpu.core_type = #tpu.core_type<tc>, window_params = [{transform_indices = @transform_0, window_bounds = array<i64: 16, 128>}, {pipeline_mode = #tpu.pipeline_mode<synchronous>, transform_indices = @transform_1, window_bounds = array<i64: 1, 128>}, {pipeline_mode = #tpu.pipeline_mode<synchronous>, transform_indices = @transform_2, window_bounds = array<i64: 1, 128>}, {pipeline_mode = #tpu.pipeline_mode<synchronous>, transform_indices = @transform_3, window_bounds = array<i64: 128, 384>}, {pipeline_mode = #tpu.pipeline_mode<synchronous>, transform_indices = @transform_4, window_bounds = array<i64: 1, 384>}, {pipeline_mode = #tpu.pipeline_mode<synchronous>, transform_indices = @transform_5, window_bounds = array<i64: 128, 128>}, {pipeline_mode = #tpu.pipeline_mode<synchronous>, transform_indices = @transform_6, window_bounds = array<i64: 1, 128>}, {pipeline_mode = #tpu.pipeline_mode<synchronous>, transform_indices = @transform_7, window_bounds = array<i64: 128, 256>}, {pipeline_mode = #tpu.pipeline_mode<synchronous>, transform_indices = @transform_8, window_bounds = array<i64: 1, 256>}, {pipeline_mode = #tpu.pipeline_mode<synchronous>, transform_indices = @transform_9, window_bounds = array<i64: 128, 128>}, {pipeline_mode = #tpu.pipeline_mode<synchronous>, transform_indices = @transform_10, window_bounds = array<i64: 1, 128>}, {pipeline_mode = #tpu.pipeline_mode<synchronous>, transform_indices = @transform_11, window_bounds = array<i64: 1, 128>}, {pipeline_mode = #tpu.pipeline_mode<synchronous>, transform_indices = @transform_12, window_bounds = array<i64: 1, 128>}, {pipeline_mode = #tpu.pipeline_mode<synchronous>, transform_indices = @transform_13, window_bounds = array<i64: 128, 128>}, {transform_indices = @transform_14, window_bounds = array<i64: 16, 128>}]} {
    %c0 = arith.constant 0 : index
    %c0_0 = arith.constant 0 : index
    %0 = vector.load %arg1[%c0, %c0_0] : memref<16x128xf32, #tpu.memory_space<vmem>>, vector<16x128xf32>
    %1 = tpu.iota {dimensions = array<i32: 1>} : vector<1x128xi32>
    %c32_i32 = arith.constant 32 : i32
    %2 = vector.broadcast %c32_i32 : i32 to vector<1x128xi32>
    %3 = arith.cmpi slt, %1, %2 : vector<1x128xi32>
    %4 = arith.extui %3 : vector<1x128xi1> to vector<1x128xi32>
    %5 = arith.sitofp %4 : vector<1x128xi32> to vector<1x128xf32>
    %c0_1 = arith.constant 0 : index
    %c0_2 = arith.constant 0 : index
    %6 = vector.load %arg2[%c0_1, %c0_2] : memref<1x128xf32, #tpu.memory_space<vmem>>, vector<1x128xf32>
    %c0_3 = arith.constant 0 : index
    %c0_4 = arith.constant 0 : index
    %7 = vector.load %arg3[%c0_3, %c0_4] : memref<1x128xf32, #tpu.memory_space<vmem>>, vector<1x128xf32>
    %cst = arith.constant dense<0.000000e+00> : vector<16xf32>
    %8 = vector.multi_reduction <add>, %0, %cst [1] : vector<16x128xf32> to vector<16xf32>
    %9 = vector.shape_cast %8 : vector<16xf32> to vector<16x1xf32>
    %cst_5 = arith.constant 3.125000e-02 : f32
    %10 = vector.broadcast %cst_5 : f32 to vector<16x1xf32>
    %11 = arith.mulf %9, %10 : vector<16x1xf32>
    %12 = vector.broadcast %11 : vector<16x1xf32> to vector<16x128xf32>
    %13 = arith.subf %0, %12 : vector<16x128xf32>
    %14 = arith.mulf %13, %13 : vector<16x128xf32>
    %15 = vector.broadcast %5 : vector<1x128xf32> to vector<16x128xf32>
    %16 = arith.mulf %14, %15 : vector<16x128xf32>
    %cst_6 = arith.constant dense<0.000000e+00> : vector<16xf32>
    %17 = vector.multi_reduction <add>, %16, %cst_6 [1] : vector<16x128xf32> to vector<16xf32>
    %18 = vector.shape_cast %17 : vector<16xf32> to vector<16x1xf32>
    %cst_7 = arith.constant 3.125000e-02 : f32
    %19 = vector.broadcast %cst_7 : f32 to vector<16x1xf32>
    %20 = arith.mulf %18, %19 : vector<16x1xf32>
    %cst_8 = arith.constant 9.99999974E-6 : f32
    %21 = vector.broadcast %cst_8 : f32 to vector<16x1xf32>
    %22 = arith.addf %20, %21 : vector<16x1xf32>
    %23 = math.rsqrt %22 : vector<16x1xf32>
    %24 = vector.broadcast %23 : vector<16x1xf32> to vector<16x128xf32>
    %25 = arith.mulf %13, %24 : vector<16x128xf32>
    %26 = vector.broadcast %6 : vector<1x128xf32> to vector<16x128xf32>
    %27 = arith.mulf %25, %26 : vector<16x128xf32>
    %28 = vector.broadcast %7 : vector<1x128xf32> to vector<16x128xf32>
    %29 = arith.addf %27, %28 : vector<16x128xf32>
    %c0_9 = arith.constant 0 : index
    %c0_10 = arith.constant 0 : index
    %30 = vector.load %arg4[%c0_9, %c0_10] : memref<128x384xf32, #tpu.memory_space<vmem>>, vector<128x384xf32>
    %cst_11 = arith.constant dense<0.000000e+00> : vector<16x384xf32>
    %31 = tpu.matmul %29, %30, %cst_11 {dimension_numbers = #tpu.dot_dimension_numbers<[1], [0], [0], [1], [0, 0, 1, 1], [], []>} : vector<16x128xf32>, vector<128x384xf32>, vector<16x384xf32> -> vector<16x384xf32>
    %c0_12 = arith.constant 0 : index
    %c0_13 = arith.constant 0 : index
    %32 = vector.load %arg5[%c0_12, %c0_13] : memref<1x384xf32, #tpu.memory_space<vmem>>, vector<1x384xf32>
    %33 = vector.broadcast %32 : vector<1x384xf32> to vector<16x384xf32>
    %34 = arith.addf %31, %33 : vector<16x384xf32>
    %35 = vector.extract_strided_slice %34 {offsets = [0, 0], sizes = [16, 128], strides = [1, 1]} : vector<16x384xf32> to vector<16x128xf32>
    %36 = vector.shape_cast %35 : vector<16x128xf32> to vector<2x8x128xf32>
    %37 = vector.extract_strided_slice %34 {offsets = [0, 128], sizes = [16, 128], strides = [1, 1]} : vector<16x384xf32> to vector<16x128xf32>
    %38 = vector.shape_cast %37 : vector<16x128xf32> to vector<2x8x128xf32>
    %39 = vector.extract_strided_slice %34 {offsets = [0, 256], sizes = [16, 128], strides = [1, 1]} : vector<16x384xf32> to vector<16x128xf32>
    %40 = vector.shape_cast %39 : vector<16x128xf32> to vector<2x8x128xf32>
    %41 = tpu.transpose %38, [0, 2, 1] : vector<2x8x128xf32> -> vector<2x128x8xf32>
    "tpu.trace_start"() <{level = 10 : i32, message = "bes,bsf->bef"}> : () -> ()
    %cst_14 = arith.constant dense<0.000000e+00> : vector<2x128x128xf32>
    %42 = tpu.matmul %41, %40, %cst_14 {dimension_numbers = #tpu.dot_dimension_numbers<[2], [1], [1], [2], [0, 0, 0, 1, 1, 2], [0], [0]>} : vector<2x128x8xf32>, vector<2x8x128xf32>, vector<2x128x128xf32> -> vector<2x128x128xf32>
    "tpu.trace_stop"() : () -> ()
    %c0_15 = arith.constant 0 : index
    %c0_16 = arith.constant 0 : index
    %43 = vector.load %arg14[%c0_15, %c0_16] : memref<128x128xf32, #tpu.memory_space<vmem>>, vector<128x128xf32>
    %44 = vector.shape_cast %43 : vector<128x128xf32> to vector<1x128x128xf32>
    %45 = vector.broadcast %44 : vector<1x128x128xf32> to vector<2x128x128xf32>
    %46 = arith.mulf %42, %45 : vector<2x128x128xf32>
    "tpu.trace_start"() <{level = 10 : i32, message = "bse,bef->bsf"}> : () -> ()
    %cst_17 = arith.constant dense<0.000000e+00> : vector<2x8x128xf32>
    %47 = tpu.matmul %36, %46, %cst_17 {dimension_numbers = #tpu.dot_dimension_numbers<[2], [1], [1], [2], [0, 0, 0, 1, 1, 2], [0], [0]>} : vector<2x8x128xf32>, vector<2x128x128xf32>, vector<2x8x128xf32> -> vector<2x8x128xf32>
    "tpu.trace_stop"() : () -> ()
    %48 = vector.shape_cast %47 : vector<2x8x128xf32> to vector<16x128xf32>
    %c0_18 = arith.constant 0 : index
    %c0_19 = arith.constant 0 : index
    %49 = vector.load %arg6[%c0_18, %c0_19] : memref<128x128xf32, #tpu.memory_space<vmem>>, vector<128x128xf32>
    %cst_20 = arith.constant dense<0.000000e+00> : vector<16x128xf32>
    %50 = tpu.matmul %48, %49, %cst_20 {dimension_numbers = #tpu.dot_dimension_numbers<[1], [0], [0], [1], [0, 0, 1, 1], [], []>} : vector<16x128xf32>, vector<128x128xf32>, vector<16x128xf32> -> vector<16x128xf32>
    %c0_21 = arith.constant 0 : index
    %c0_22 = arith.constant 0 : index
    %51 = vector.load %arg7[%c0_21, %c0_22] : memref<1x128xf32, #tpu.memory_space<vmem>>, vector<1x128xf32>
    %52 = vector.broadcast %51 : vector<1x128xf32> to vector<16x128xf32>
    %53 = arith.addf %50, %52 : vector<16x128xf32>
    %c0_23 = arith.constant 0 : index
    %c0_24 = arith.constant 0 : index
    %54 = vector.load %arg8[%c0_23, %c0_24] : memref<128x256xf32, #tpu.memory_space<vmem>>, vector<128x256xf32>
    %cst_25 = arith.constant dense<0.000000e+00> : vector<16x256xf32>
    %55 = tpu.matmul %53, %54, %cst_25 {dimension_numbers = #tpu.dot_dimension_numbers<[1], [0], [0], [1], [0, 0, 1, 1], [], []>} : vector<16x128xf32>, vector<128x256xf32>, vector<16x256xf32> -> vector<16x256xf32>
    %c0_26 = arith.constant 0 : index
    %c0_27 = arith.constant 0 : index
    %56 = vector.load %arg9[%c0_26, %c0_27] : memref<1x256xf32, #tpu.memory_space<vmem>>, vector<1x256xf32>
    %57 = vector.broadcast %56 : vector<1x256xf32> to vector<16x256xf32>
    %58 = arith.addf %55, %57 : vector<16x256xf32>
    %59 = vector.extract_strided_slice %58 {offsets = [0, 0], sizes = [16, 128], strides = [1, 1]} : vector<16x256xf32> to vector<16x128xf32>
    %60 = vector.extract_strided_slice %58 {offsets = [0, 128], sizes = [16, 128], strides = [1, 1]} : vector<16x256xf32> to vector<16x128xf32>
    %c0_28 = arith.constant 0 : index
    %c0_29 = arith.constant 0 : index
    %61 = vector.load %arg10[%c0_28, %c0_29] : memref<128x128xf32, #tpu.memory_space<vmem>>, vector<128x128xf32>
    %cst_30 = arith.constant dense<0.000000e+00> : vector<16x128xf32>
    %62 = tpu.matmul %60, %61, %cst_30 {dimension_numbers = #tpu.dot_dimension_numbers<[1], [0], [0], [1], [0, 0, 1, 1], [], []>} : vector<16x128xf32>, vector<128x128xf32>, vector<16x128xf32> -> vector<16x128xf32>
    %c0_31 = arith.constant 0 : index
    %c0_32 = arith.constant 0 : index
    %63 = vector.load %arg11[%c0_31, %c0_32] : memref<1x128xf32, #tpu.memory_space<vmem>>, vector<1x128xf32>
    %64 = vector.broadcast %63 : vector<1x128xf32> to vector<16x128xf32>
    %65 = arith.addf %62, %64 : vector<16x128xf32>
    %66 = arith.addf %59, %65 : vector<16x128xf32>
    %c0_33 = arith.constant 0 : index
    %c0_34 = arith.constant 0 : index
    %67 = vector.load %arg12[%c0_33, %c0_34] : memref<1x128xf32, #tpu.memory_space<vmem>>, vector<1x128xf32>
    %c0_35 = arith.constant 0 : index
    %c0_36 = arith.constant 0 : index
    %68 = vector.load %arg13[%c0_35, %c0_36] : memref<1x128xf32, #tpu.memory_space<vmem>>, vector<1x128xf32>
    %cst_37 = arith.constant dense<0.000000e+00> : vector<16xf32>
    %69 = vector.multi_reduction <add>, %66, %cst_37 [1] : vector<16x128xf32> to vector<16xf32>
    %70 = vector.shape_cast %69 : vector<16xf32> to vector<16x1xf32>
    %cst_38 = arith.constant 3.125000e-02 : f32
    %71 = vector.broadcast %cst_38 : f32 to vector<16x1xf32>
    %72 = arith.mulf %70, %71 : vector<16x1xf32>
    %73 = vector.broadcast %72 : vector<16x1xf32> to vector<16x128xf32>
    %74 = arith.subf %66, %73 : vector<16x128xf32>
    %75 = arith.mulf %74, %74 : vector<16x128xf32>
    %76 = vector.broadcast %5 : vector<1x128xf32> to vector<16x128xf32>
    %77 = arith.mulf %75, %76 : vector<16x128xf32>
    %cst_39 = arith.constant dense<0.000000e+00> : vector<16xf32>
    %78 = vector.multi_reduction <add>, %77, %cst_39 [1] : vector<16x128xf32> to vector<16xf32>
    %79 = vector.shape_cast %78 : vector<16xf32> to vector<16x1xf32>
    %cst_40 = arith.constant 3.125000e-02 : f32
    %80 = vector.broadcast %cst_40 : f32 to vector<16x1xf32>
    %81 = arith.mulf %79, %80 : vector<16x1xf32>
    %cst_41 = arith.constant 9.99999974E-6 : f32
    %82 = vector.broadcast %cst_41 : f32 to vector<16x1xf32>
    %83 = arith.addf %81, %82 : vector<16x1xf32>
    %84 = math.rsqrt %83 : vector<16x1xf32>
    %85 = vector.broadcast %84 : vector<16x1xf32> to vector<16x128xf32>
    %86 = arith.mulf %74, %85 : vector<16x128xf32>
    %87 = vector.broadcast %67 : vector<1x128xf32> to vector<16x128xf32>
    %88 = arith.mulf %86, %87 : vector<16x128xf32>
    %89 = vector.broadcast %68 : vector<1x128xf32> to vector<16x128xf32>
    %90 = arith.addf %88, %89 : vector<16x128xf32>
    %c0_42 = arith.constant 0 : index
    %c0_43 = arith.constant 0 : index
    %91 = vector.load %arg15[%c0_42, %c0_43] : memref<16x128xf32, #tpu.memory_space<vmem>>, vector<16x128xf32>
    tpu.vector_store %arg15[%c0_42, %c0_43], %90 {strides = array<i32>} : memref<16x128xf32, #tpu.memory_space<vmem>>, vector<16x128xf32>,
    return
  }
  func.func @transform_0(%arg0: i32) -> (i32, i32) {
    %c0_i32 = arith.constant 0 : i32
    %c0_i32_0 = arith.constant 0 : i32
    return %arg0, %c0_i32 : i32, i32
  }
  func.func @transform_1(%arg0: i32) -> (i32, i32) {
    %c0_i32 = arith.constant 0 : i32
    %c0_i32_0 = arith.constant 0 : i32
    %c0_i32_1 = arith.constant 0 : i32
    return %c0_i32, %c0_i32_0 : i32, i32
  }
  func.func @transform_2(%arg0: i32) -> (i32, i32) {
    %c0_i32 = arith.constant 0 : i32
    %c0_i32_0 = arith.constant 0 : i32
    %c0_i32_1 = arith.constant 0 : i32
    return %c0_i32, %c0_i32_0 : i32, i32
  }
  func.func @transform_3(%arg0: i32) -> (i32, i32) {
    %c0_i32 = arith.constant 0 : i32
    %c0_i32_0 = arith.constant 0 : i32
    %c0_i32_1 = arith.constant 0 : i32
    return %c0_i32, %c0_i32_0 : i32, i32
  }
  func.func @transform_4(%arg0: i32) -> (i32, i32) {
    %c0_i32 = arith.constant 0 : i32
    %c0_i32_0 = arith.constant 0 : i32
    %c0_i32_1 = arith.constant 0 : i32
    return %c0_i32, %c0_i32_0 : i32, i32
  }
  func.func @transform_5(%arg0: i32) -> (i32, i32) {
    %c0_i32 = arith.constant 0 : i32
    %c0_i32_0 = arith.constant 0 : i32
    %c0_i32_1 = arith.constant 0 : i32
    return %c0_i32, %c0_i32_0 : i32, i32
  }
  func.func @transform_6(%arg0: i32) -> (i32, i32) {
    %c0_i32 = arith.constant 0 : i32
    %c0_i32_0 = arith.constant 0 : i32
    %c0_i32_1 = arith.constant 0 : i32
    return %c0_i32, %c0_i32_0 : i32, i32
  }
  func.func @transform_7(%arg0: i32) -> (i32, i32) {
    %c0_i32 = arith.constant 0 : i32
    %c0_i32_0 = arith.constant 0 : i32
    %c0_i32_1 = arith.constant 0 : i32
    return %c0_i32, %c0_i32_0 : i32, i32
  }
  func.func @transform_8(%arg0: i32) -> (i32, i32) {
    %c0_i32 = arith.constant 0 : i32
    %c0_i32_0 = arith.constant 0 : i32
    %c0_i32_1 = arith.constant 0 : i32
    return %c0_i32, %c0_i32_0 : i32, i32
  }
  func.func @transform_9(%arg0: i32) -> (i32, i32) {
    %c0_i32 = arith.constant 0 : i32
    %c0_i32_0 = arith.constant 0 : i32
    %c0_i32_1 = arith.constant 0 : i32
    return %c0_i32, %c0_i32_0 : i32, i32
  }
  func.func @transform_10(%arg0: i32) -> (i32, i32) {
    %c0_i32 = arith.constant 0 : i32
    %c0_i32_0 = arith.constant 0 : i32
    %c0_i32_1 = arith.constant 0 : i32
    return %c0_i32, %c0_i32_0 : i32, i32
  }
  func.func @transform_11(%arg0: i32) -> (i32, i32) {
    %c0_i32 = arith.constant 0 : i32
    %c0_i32_0 = arith.constant 0 : i32
    %c0_i32_1 = arith.constant 0 : i32
    return %c0_i32, %c0_i32_0 : i32, i32
  }
  func.func @transform_12(%arg0: i32) -> (i32, i32) {
    %c0_i32 = arith.constant 0 : i32
    %c0_i32_0 = arith.constant 0 : i32
    %c0_i32_1 = arith.constant 0 : i32
    return %c0_i32, %c0_i32_0 : i32, i32
  }
  func.func @transform_13(%arg0: i32) -> (i32, i32) {
    %c0_i32 = arith.constant 0 : i32
    %c0_i32_0 = arith.constant 0 : i32
    %c0_i32_1 = arith.constant 0 : i32
    return %c0_i32, %c0_i32_0 : i32, i32
  }
  func.func @transform_14(%arg0: i32) -> (i32, i32) {
    %c0_i32 = arith.constant 0 : i32
    %c0_i32_0 = arith.constant 0 : i32
    return %arg0, %c0_i32 : i32, i32
  }
}

</mosaic_0001>

<bundles_post_ra>
// kernel: tpu_custom_call.1
= control target key start
LH: loop header
LB: loop body
LE: loop exit
PB: predicated region body
PF: predicated region fallthrough
CT: control target
= control target key end

     0   :  { %19 = vsyncpa [#allocation3], 0  ;;  %s2513_s0 = inlined_call_operand.hbm [shape: f32[16,128], index: 0, kind: input, shape index: {}]   ;;  %s2514_s1 = inlined_call_operand.vmem [shape: f32[1,128], index: 1, kind: input, shape index: {}]   ;;  %s2515_s2 = inlined_call_operand.vmem [shape: f32[1,128], index: 2, kind: input, shape index: {}]   ;;  %s2516_s3 = inlined_call_operand.hbm [shape: f32[128,384], index: 3, kind: input, shape index: {}]   ;;  %s2517_s4 = inlined_call_operand.vmem [shape: f32[1,384], index: 4, kind: input, shape index: {}]   ;;  %s2518_s5 = inlined_call_operand.hbm [shape: f32[128,128], index: 5, kind: input, shape index: {}]   ;;  %s2519_s6 = inlined_call_operand.vmem [shape: f32[1,128], index: 6, kind: input, shape index: {}]   ;;  %s2520_s7 = inlined_call_operand.hbm [shape: f32[128,256], index: 7, kind: input, shape index: {}]   ;;  %s2521_s8 = inlined_call_operand.vmem [shape: f32[1,256], index: 8, kind: input, shape index: {}]   ;;  %s2522_s9 = inlined_call_operand.hbm [shape: f32[128,128], index: 9, kind: input, shape index: {}]   ;;  %s2523_s10 = inlined_call_operand.vmem [shape: f32[1,128], index: 10, kind: input, shape index: {}]   ;;  %s2524_s11 = inlined_call_operand.vmem [shape: f32[1,128], index: 11, kind: input, shape index: {}]   ;;  %s2525_s12 = inlined_call_operand.vmem [shape: f32[1,128], index: 12, kind: input, shape index: {}]   ;;  %s2526_s13 = inlined_call_operand.hbm [shape: f32[128,128], index: 13, kind: input, shape index: {}]   ;;  %s2527_s14 = inlined_call_operand.hbm [shape: f32[16,128], index: 14, kind: output, shape index: {}]  }
   0x1   :  { %20 = vsyncpa [#allocation6], 0 }
   0x2   :  { %21 = vsyncpa [#allocation9], 0 }
   0x3   :  { %22 = vsyncpa [#allocation12], 0 }
   0x4   :  { %23 = vsyncpa [#allocation4], 0  ;;  %s2202_s29 = smov [#allocation5]   ;;  %s2038_s17 = scalar_lea.hbm %s2516_s3, 6144 }
   0x5   :  { %s45_s30 = sshll.u32 %s2202_s29, 4  ;;  %p2039_p0 = scmp.ne.s32.totalorder %s2516_s3, %s2038_s17  ;;  %s46_s30 = int_to_ptr.vmem [resolvable:$true] %s45_s30 }
   0x6   :  { %p2042_p1 = scmp.lt.u32.totalorder %s2038_s17, %s2516_s3 }
   0x8   :  { %p2044_p2 = pnand %p2042_p1, %p2039_p0 }
   0xa   :  { %2047 = shalt.err (!%p2044_p2)
}
   0xb   :  { %s2048_s22 = scalar_lea.vmem %s46_s30, 6144  ;;  %p2053_p4 = scmp.lt.s32.totalorder %s46_s30, %s46_s30 }
   0xc   :  { %p2049_p3 = scmp.ne.s32.totalorder %s46_s30, %s2048_s22  ;;  %p2054_p5 = scmp.lt.s32.totalorder %s2048_s22, %s2048_s22 }
   0xe   :  { %p2055_p6 = por %p2054_p5, %p2053_p4 }
  0x10   :  { %p2056_p7 = pnand %p2055_p6, %p2049_p3 }
  0x12   :  { %2059 = shalt.err (!%p2056_p7)
}
  0x13   :  { %s2203_s23 = smov 384   ;;  %s2204_s24 = smov 24  }
  0x14   :  { %51 = dma.hbm_to_vmem [thread:$0]  %s2516_s3, 6144, %s46_s30, [#allocation6], %s2203_s23, %s2203_s23, %s2204_s24  }
  0x15   :  { %s2205_s27 = smov [#allocation8]   ;;  %s2060_s16 = scalar_lea.hbm %s2520_s7, 4096 }
  0x16   :  { %s73_s28 = sshll.u32 %s2205_s27, 4  ;;  %p2061_p8 = scmp.ne.s32.totalorder %s2520_s7, %s2060_s16  ;;  %s74_s28 = int_to_ptr.vmem [resolvable:$true] %s73_s28 }
  0x17   :  { %p2064_p9 = scmp.lt.u32.totalorder %s2060_s16, %s2520_s7 }
  0x19   :  { %p2066_p10 = pnand %p2064_p9, %p2061_p8 }
  0x1b   :  { %2069 = shalt.err (!%p2066_p10)
}
  0x1c   :  { %s2070_s21 = scalar_lea.vmem %s74_s28, 4096  ;;  %p2075_p12 = scmp.lt.s32.totalorder %s74_s28, %s74_s28 }
  0x1d   :  { %p2071_p11 = scmp.ne.s32.totalorder %s74_s28, %s2070_s21  ;;  %p2076_p13 = scmp.lt.s32.totalorder %s2070_s21, %s2070_s21 }
  0x1f   :  { %p2077_p0 = por %p2076_p13, %p2075_p12 }
  0x21   :  { %p2078_p1 = pnand %p2077_p0, %p2071_p11 }
  0x23   :  { %2081 = shalt.err (!%p2078_p1)
}
  0x24   :  { %s2206_s3 = smov 256   ;;  %s2207_s30 = smov 16  }
  0x25   :  { %79 = dma.hbm_to_vmem [thread:$0]  %s2520_s7, 4096, %s74_s28, [#allocation9], %s2206_s3, %s2206_s3, %s2207_s30  }
  0x26   :  { %s2208_s24 = smov [#allocation2]   ;;  %s2082_s29 = scalar_lea.hbm %s2513_s0, 256 }
  0x27   :  { %s29_s25 = sshll.u32 %s2208_s24, 4  ;;  %p2083_p2 = scmp.ne.s32.totalorder %s2513_s0, %s2082_s29  ;;  %s30_s25 = int_to_ptr.vmem [resolvable:$true] %s29_s25 }
  0x28   :  { %p2086_p3 = scmp.lt.u32.totalorder %s2082_s29, %s2513_s0 }
  0x2a   :  { %p2088_p4 = pnand %p2086_p3, %p2083_p2 }
  0x2c   :  { %2091 = shalt.err (!%p2088_p4)
}
  0x2d   :  { %s2092_s19 = scalar_lea.vmem %s30_s25, 256  ;;  %p2097_p6 = scmp.lt.s32.totalorder %s30_s25, %s30_s25 }
  0x2e   :  { %p2093_p5 = scmp.ne.s32.totalorder %s30_s25, %s2092_s19  ;;  %p2098_p7 = scmp.lt.s32.totalorder %s2092_s19, %s2092_s19 }
  0x30   :  { %p2099_p8 = por %p2098_p7, %p2097_p6 }
  0x32   :  { %p2100_p9 = pnand %p2099_p8, %p2093_p5 }
  0x34   :  { %2103 = shalt.err (!%p2100_p9)
}
  0x35   :  { %s2209_s7 = smov 128   ;;  %s2210_s28 = smov 8  }
  0x36   :  { %35 = dma.hbm_to_vmem [thread:$0]  %s2513_s0, 256, %s30_s25, [#allocation3], %s2209_s7, %s2209_s7, %s2210_s28  }
  0x37   :  { %s2211_s3 = smov [#allocation7]   ;;  %s2212_s22 = smov [#allocation10]  }
  0x38   :  { %s59_s30 = sshll.u32 %s2211_s3, 4  ;;  %s87_s23 = sshll.u32 %s2212_s22, 4  ;;  %s60_s30 = int_to_ptr.vmem [resolvable:$true] %s59_s30  ;;  %s88_s23 = int_to_ptr.vmem [resolvable:$true] %s87_s23 }
  0x39   :  { %s2104_s27 = scalar_lea.hbm %s2518_s5, 2048 }
  0x3a   :  { %p2105_p10 = scmp.ne.s32.totalorder %s2518_s5, %s2104_s27  ;;  %p2108_p11 = scmp.lt.u32.totalorder %s2104_s27, %s2518_s5 }
  0x3c   :  { %p2110_p12 = pnand %p2108_p11, %p2105_p10 }
  0x3e   :  { %2113 = shalt.err (!%p2110_p12)
}
  0x3f   :  { %s2114_s0 = scalar_lea.vmem %s60_s30, 2048  ;;  %p2119_p0 = scmp.lt.s32.totalorder %s60_s30, %s60_s30 }
  0x40   :  { %p2115_p13 = scmp.ne.s32.totalorder %s60_s30, %s2114_s0  ;;  %p2120_p1 = scmp.lt.s32.totalorder %s2114_s0, %s2114_s0 }
  0x42   :  { %p2121_p2 = por %p2120_p1, %p2119_p0 }
  0x44   :  { %p2122_p3 = pnand %p2121_p2, %p2115_p13 }
  0x46   :  { %2125 = shalt.err (!%p2122_p3)
}
  0x47   :  { %65 = dma.hbm_to_vmem [thread:$0]  %s2518_s5, 2048, %s60_s30, [#allocation6], %s2209_s7, %s2209_s7, %s2210_s28  }
  0x48   :  { %s2126_s21 = scalar_lea.hbm %s2522_s9, 2048 }
  0x49   :  { %p2127_p4 = scmp.ne.s32.totalorder %s2522_s9, %s2126_s21  ;;  %p2130_p5 = scmp.lt.u32.totalorder %s2126_s21, %s2522_s9 }
  0x4b   :  { %p2132_p6 = pnand %p2130_p5, %p2127_p4 }
  0x4d   :  { %2135 = shalt.err (!%p2132_p6)
}
  0x4e   :  { %s2136_s27 = scalar_lea.vmem %s88_s23, 2048  ;;  %p2141_p8 = scmp.lt.s32.totalorder %s88_s23, %s88_s23 }
  0x4f   :  { %p2137_p7 = scmp.ne.s32.totalorder %s88_s23, %s2136_s27  ;;  %p2142_p9 = scmp.lt.s32.totalorder %s2136_s27, %s2136_s27 }
  0x51   :  { %p2143_p10 = por %p2142_p9, %p2141_p8 }
  0x53   :  { %p2144_p11 = pnand %p2143_p10, %p2137_p7 }
  0x55   :  { %2147 = shalt.err (!%p2144_p11)
}
  0x56   :  { %93 = dma.hbm_to_vmem [thread:$0]  %s2522_s9, 2048, %s88_s23, [#allocation9], %s2209_s7, %s2209_s7, %s2210_s28  }
  0x57   :  { %s2213_s29 = smov [#allocation11]   ;;  %s2148_s0 = scalar_lea.hbm %s2526_s13, 2048 }
  0x58   :  { %s105_s15 = sshll.u32 %s2213_s29, 4  ;;  %p2149_p12 = scmp.ne.s32.totalorder %s2526_s13, %s2148_s0  ;;  %s106_s15 = int_to_ptr.vmem [resolvable:$true] %s105_s15 }
  0x59   :  { %p2152_p13 = scmp.lt.u32.totalorder %s2148_s0, %s2526_s13 }
  0x5b   :  { %p2154_p0 = pnand %p2152_p13, %p2149_p12 }
  0x5d   :  { %2157 = shalt.err (!%p2154_p0)
}
  0x5e   :  { %s2158_s21 = scalar_lea.vmem %s106_s15, 2048  ;;  %p2163_p2 = scmp.lt.s32.totalorder %s106_s15, %s106_s15 }
  0x5f   :  { %p2159_p1 = scmp.ne.s32.totalorder %s106_s15, %s2158_s21  ;;  %p2164_p3 = scmp.lt.s32.totalorder %s2158_s21, %s2158_s21 }
  0x61   :  { %p2165_p4 = por %p2164_p3, %p2163_p2 }
  0x63   :  { %p2166_p5 = pnand %p2165_p4, %p2159_p1 }
  0x65   :  { %2169 = shalt.err (!%p2166_p5)
}
  0x66   :  { %111 = dma.hbm_to_vmem [thread:$0]  %s2526_s13, 2048, %s106_s15, [#allocation12], %s2209_s7, %s2209_s7, %s2210_s28  }
  0x67   :  { %2192 = dma.done.wait [#allocation3], 256  }
  0x68   :  { %2193 = vsyncadd [#allocation3], 4294967040 }
  0x69   :  { %2194 = dma.done.wait [#allocation6], 8192  }
  0x6a   :  { %2195 = vsyncadd [#allocation6], 4294959104 }
  0x6b   :  { %2196 = dma.done.wait [#allocation9], 6144  }
  0x6c   :  { %2197 = vsyncadd [#allocation9], 4294961152 }
  0x6d   :  { %2198 = dma.done.wait [#allocation12], 2048  }
  0x6e   :  { %2199 = vsyncadd [#allocation12], 4294965248  ;;  %v130_v0 = vld [vmem:[#allocation2] sm:$0xff]  ;;  %v131_v1 = vld [vmem:[#allocation2 + $0x8] sm:$0xff]  ;;  %v2214_v2 = vmov 0.0   ;;  %v132_v27 = vlaneseq  ;;  %vm460_vm1 = vcmask 64512  }
  0x6f   :  { %139 = vadd.xlane.f32.xlu0 %v130_v0  ;;  %308 = vmatprep.mubr.f32.mxu0 %v2214_v2  ;;  %v180_v3 = vld [vmem:[#allocation5 + $0x8] sm:$0xff]  ;;  %v183_v4 = vld [vmem:[#allocation5 + $0x20] sm:$0xff]  ;;  %v182_v7 = vld [vmem:[#allocation5 + $0x18] sm:$0xff]  ;;  %vm2216_vm2 = vmmov 0   ;;  %s2217_s16 = smov [#allocation13]  }
  0x70   :  { %v179_v5 = vld [vmem:[#allocation5] sm:$0xff]  ;;  %v1806_v6 = vpack.c.bf16 %v183_v4, %v180_v3  ;;  %v186_v8 = vld [vmem:[#allocation5 + $0x38] sm:$0xff]  ;;  %v189_v9 = vld [vmem:[#allocation5 + $0x50] sm:$0xff]  ;;  %v133_v28 = vand.u32 127, %v132_v27  ;;  %s1403_s17 = sshll.u32 %s2217_s16, 4  ;;  %s1404_s17 = int_to_ptr.vmem [resolvable:$true] %s1403_s17 }
  0x71   :  { %v1808_v10 = vpack.c.bf16 %v182_v7, %v179_v5  ;;  %v1810_v11 = vpack.c.bf16 %v189_v9, %v186_v8  ;;  %v181_v12 = vld [vmem:[#allocation5 + $0x10] sm:$0xff]  ;;  %v184_v13 = vld [vmem:[#allocation5 + $0x28] sm:$0xff]  ;;  %v195_v18 = vld [vmem:[#allocation5 + $0x80] sm:$0xff]  ;;  %s2170_s0 = scalar_lea.vmem %s1404_s17, 256  ;;  %p2175_p7 = scmp.lt.s32.totalorder %s1404_s17, %s1404_s17 }
  0x72   :  { %v185_v14 = vld [vmem:[#allocation5 + $0x30] sm:$0xff]  ;;  %1807 = vmatprep.subr.bf16.mxu0 %v1806_v6  ;;  %v1838_v15 = vpack.c.bf16 %v184_v13, %v181_v12  ;;  %v188_v16 = vld [vmem:[#allocation5 + $0x48] sm:$0xff]  ;;  %v187_v20 = vld [vmem:[#allocation5 + $0x40] sm:$0xff]  ;;  %vm134_vm0 = vcmp.lt.s32.totalorder %v133_v28, 32  ;;  %p2171_p6 = scmp.ne.s32.totalorder %s1404_s17, %s2170_s0  ;;  %p2176_p8 = scmp.lt.s32.totalorder %s2170_s0, %s2170_s0 }
  0x73   :  { %141 = vadd.xlane.f32.xlu0 %v131_v1  ;;  %v192_v17 = vld [vmem:[#allocation5 + $0x68] sm:$0xff]  ;;  %1809 = vmatpush1.bf16.msra.mxu0 %v1808_v10  ;;  %v1812_v19 = vpack.c.bf16 %v188_v16, %v185_v14  ;;  %v190_v21 = vld [vmem:[#allocation5 + $0x58] sm:$0xff]  ;;  %v191_v24 = vld [vmem:[#allocation5 + $0x60] sm:$0xff]  ;;  %v2382_v33 = vsel %vm134_vm0, 1.0, %v2214_v2 }
  0x74   :  { %1811 = vmatprep.subr.bf16.mxu0 %v1810_v11  ;;  %1839 = vmatprep.subr.bf16.mxu1 %v1838_v15  ;;  %v1814_v22 = vpack.c.bf16 %v195_v18, %v192_v17  ;;  %v1842_v23 = vpack.c.bf16 %v190_v21, %v187_v20  ;;  %v194_v25 = vld [vmem:[#allocation5 + $0x78] sm:$0xff]  ;;  %v201_v41 = vld [vmem:[#allocation5 + $0xb0] sm:$0xff]  ;;  %v196_v44 = vld [vmem:[#allocation5 + $0x88] sm:$0xff]  ;;  %p2177_p9 = por %p2176_p8, %p2175_p7 }
  0x75   :  { %1841 = vmatpush3.bf16.msra.mxu1 %v1838_v15  ;;  %v1816_v26 = vpack.c.bf16 %v194_v25, %v191_v24  ;;  %v198_v40 = vld [vmem:[#allocation5 + $0x98] sm:$0xff]  ;;  %v193_v42 = vld [vmem:[#allocation5 + $0x70] sm:$0xff]  ;;  %v200_v46 = vld [vmem:[#allocation5 + $0xa8] sm:$0xff] }
  0x76   :  { %1843 = vmatprep.subr.bf16.mxu1 %v1842_v23  ;;  %v1818_v43 = vpack.c.bf16 %v201_v41, %v198_v40  ;;  %v197_v45 = vld [vmem:[#allocation5 + $0x90] sm:$0xff]  ;;  %v1846_v47 = vpack.c.bf16 %v196_v44, %v193_v42  ;;  %v204_v49 = vld [vmem:[#allocation5 + $0xc8] sm:$0xff]  ;;  %v207_v50 = vld [vmem:[#allocation5 + $0xe0] sm:$0xff]  ;;  %p2178_p10 = pnand %p2177_p9, %p2171_p6 }
  0x77   :  { %1813 = vmatpush1.bf16.msra.mxu0 %v1812_v19  ;;  %v1820_v48 = vpack.c.bf16 %v200_v46, %v197_v45  ;;  %v199_v51 = vld [vmem:[#allocation5 + $0xa0] sm:$0xff]  ;;  %v1822_v52 = vpack.c.bf16 %v207_v50, %v204_v49  ;;  %v202_v53 = vld [vmem:[#allocation5 + $0xb8] sm:$0xff]  ;;  %v213_v59 = vld [vmem:[#allocation5 + $0x110] sm:$0xff]  ;;  %v2402_v45 = vshrl.u32 %v132_v27, 7 }
  0x78   :  { %1815 = vmatprep.subr.bf16.mxu0 %v1814_v22  ;;  %v203_v54 = vld [vmem:[#allocation5 + $0xc0] sm:$0xff]  ;;  %v206_v55 = vld [vmem:[#allocation5 + $0xd8] sm:$0xff]  ;;  %v1850_v56 = vpack.c.bf16 %v202_v53, %v199_v51  ;;  %v205_v60 = vld [vmem:[#allocation5 + $0xd0] sm:$0xff] }
  0x79   :  { %1845 = vmatpush3.bf16.msra.mxu1 %v1842_v23  ;;  %v1824_v57 = vpack.c.bf16 %v206_v55, %v203_v54  ;;  %v210_v58 = vld [vmem:[#allocation5 + $0xf8] sm:$0xff]  ;;  %v208_v62 = vld [vmem:[#allocation5 + $0xe8] sm:$0xff]  ;;  %v209_v63 = vld [vmem:[#allocation5 + $0xf0] sm:$0xff] }
  0x7a   :  { %1847 = vmatprep.subr.bf16.mxu1 %v1846_v47  ;;  %v1826_v61 = vpack.c.bf16 %v213_v59, %v210_v58  ;;  %v216_v4 = vld [vmem:[#allocation5 + $0x128] sm:$0xff]  ;;  %v219_v5 = vld [vmem:[#allocation5 + $0x140] sm:$0xff]  ;;  %v214_v8 = vld [vmem:[#allocation5 + $0x118] sm:$0xff] }
  0x7b   :  { %1817 = vmatpush1.bf16.msra.mxu0 %v1816_v26  ;;  %v211_v6 = vld [vmem:[#allocation5 + $0x100] sm:$0xff]  ;;  %v1830_v7 = vpack.c.bf16 %v219_v5, %v216_v4  ;;  %v218_v10 = vld [vmem:[#allocation5 + $0x138] sm:$0xff]  ;;  %v225_v14 = vld [vmem:[#allocation5 + $0x170] sm:$0xff] }
  0x7c   :  { %1819 = vmatprep.subr.bf16.mxu0 %v1818_v43  ;;  %v215_v9 = vld [vmem:[#allocation5 + $0x120] sm:$0xff]  ;;  %v1858_v11 = vpack.c.bf16 %v214_v8, %v211_v6  ;;  %v222_v13 = vld [vmem:[#allocation5 + $0x158] sm:$0xff]  ;;  %v217_v15 = vld [vmem:[#allocation5 + $0x130] sm:$0xff] }
  0x7d   :  { %1849 = vmatpush3.bf16.msra.mxu1 %v1846_v47  ;;  %v1832_v12 = vpack.c.bf16 %v218_v10, %v215_v9  ;;  %v1834_v16 = vpack.c.bf16 %v225_v14, %v222_v13  ;;  %v220_v17 = vld [vmem:[#allocation5 + $0x148] sm:$0xff]  ;;  %v221_v18 = vld [vmem:[#allocation5 + $0x150] sm:$0xff]  ;;  %v223_v22 = vld [vmem:[#allocation5 + $0x160] sm:$0xff] }
  0x7e   :  { %1851 = vmatprep.subr.bf16.mxu1 %v1850_v56  ;;  %v224_v19 = vld [vmem:[#allocation5 + $0x168] sm:$0xff]  ;;  %v1862_v20 = vpack.c.bf16 %v220_v17, %v217_v15  ;;  %v226_v23 = vld [vmem:[#allocation5 + $0x178] sm:$0xff]  ;;  %v2408_v46 = vld [vmem:[%s2517_s4] sm:$0x7] }
  0x7f   :  { %1821 = vmatpush1.bf16.msra.mxu0 %v1820_v48  ;;  %v1836_v21 = vpack.c.bf16 %v224_v19, %v221_v18  ;;  %v1866_v24 = vpack.c.bf16 %v226_v23, %v223_v22 }
  0x80   :  { %1823 = vmatprep.subr.bf16.mxu0 %v1822_v52 }
  0x81   :  { %1853 = vmatpush3.bf16.msra.mxu1 %v1850_v56 }
  0x83   :  { %1825 = vmatpush1.bf16.msra.mxu0 %v1824_v57 }
  0x84   :  { %1827 = vmatprep.subr.bf16.mxu0 %v1826_v61 }
  0xfc   :  { %v140_v29 = vpop.xlane.xlu0 %139 }
  0xfd   :  { %v143_v30 = vmul.f32 0.03125, %v140_v29 }
  0xff   :  { %v2379_v31 = vsub.f32 %v130_v0, %v143_v30  ;;  %v212_v0 = vld [vmem:[#allocation5 + $0x108] sm:$0xff] }
 0x100   :  { %v142_v32 = vpop.xlane.xlu0 %141  ;;  %v1828_v3 = vpack.c.bf16 %v212_v0, %v209_v63 }
 0x101   :  { %v144_v34 = vmul.f32 0.03125, %v142_v32  ;;  %v147_v35 = vmul.f32 %v2379_v31, %v2379_v31 }
 0x102   :  { %1829 = vmatpush1.bf16.msra.mxu0 %v1828_v3 }
 0x103   :  { %v2386_v36 = vsub.f32 %v131_v1, %v144_v34  ;;  %v149_v37 = vmul.f32 %v2382_v33, %v147_v35  ;;  %v1854_v1 = vpack.c.bf16 %v208_v62, %v205_v60  ;;  %1831 = vmatprep.subr.bf16.mxu0 %v1830_v7  ;;  %v1419_v35 = vld [vmem:[%s2514_s1] ss:$0 sm:$0xff] }
 0x105   :  { %151 = vadd.xlane.f32.xlu1 %v149_v37  ;;  %v148_v38 = vmul.f32 %v2386_v36, %v2386_v36  ;;  %1855 = vmatprep.subr.bf16.mxu1 %v1854_v1 }
 0x106   :  { %1857 = vmatpush3.bf16.msra.mxu1 %v1854_v1  ;;  %1833 = vmatpush1.bf16.msra.mxu0 %v1832_v12 }
 0x107   :  { %v150_v39 = vmul.f32 %v2382_v33, %v148_v38  ;;  %1859 = vmatprep.subr.bf16.mxu1 %v1858_v11  ;;  %1835 = vmatprep.subr.bf16.mxu0 %v1834_v16  ;;  %v1420_v38 = vld [vmem:[%s2515_s2] ss:$0 sm:$0xff] }
 0x109   :  { %153 = vadd.xlane.f32.xlu1 %v150_v39 }
 0x10a   :  { %1861 = vmatpush3.bf16.msra.mxu1 %v1858_v11  ;;  %1837 = vmatpush1.bf16.msra.mxu0 %v1836_v21 }
 0x10b   :  { %1863 = vmatprep.subr.bf16.mxu1 %v1862_v20 }
 0x10e   :  { %1865 = vmatpush3.bf16.msra.mxu1 %v1862_v20 }
 0x10f   :  { %1867 = vmatprep.subr.bf16.mxu1 %v1866_v24 }
 0x112   :  { %1869 = vmatpush3.bf16.msra.mxu1 %v1866_v24 }
 0x192   :  { %v152_v25 = vpop.xlane.xlu1 %151 }
 0x193   :  { %v155_v26 = vmul.f32 0.03125, %v152_v25 }
 0x195   :  { %v157_v28 = vadd.f32 1e-05, %v155_v26 }
 0x196   :  { %v154_v29 = vpop.xlane.xlu1 %153 }
 0x197   :  { %2030 = vrsqrt.f32 %v157_v28  ;;  %v156_v30 = vmul.f32 0.03125, %v154_v29  ;;  %v2215_v28 = vmov 0.0|0.0   ;;  %v848_v29 = vld [vmem:[#allocation11 + $0x8] sm:$0xff] }
 0x199   :  { %v158_v32 = vadd.f32 1e-05, %v156_v30  ;;  %v847_v30 = vld [vmem:[#allocation11] sm:$0xff] }
 0x19b   :  { %2032 = vrsqrt.f32 %v158_v32 }
 0x1a1   :  { %v2031_v34 = vpop.eup %2030 }
 0x1a2   :  { %v161_v37 = vmul.f32 %v2031_v34, %v2379_v31  ;;  %v235_v31 = vsub.s32 1, %v2402_v45 }
 0x1a4   :  { %v169_v39 = vmul.f32 %v1419_v35, %v161_v37  ;;  %v236_v47 = vrot.slane %v2408_v46, %v235_v31 }
 0x1a5   :  { %v2033_v40 = vpop.eup %2032 }
 0x1a6   :  { %v177_v41 = vadd.f32 %v1420_v38, %v169_v39  ;;  %v162_v42 = vmul.f32 %v2033_v40, %v2386_v36  ;;  %v239_v36 = vsub.s32 2, %v2402_v45 }
 0x1a8   :  { %309 = vmatmul.mubr.f32.vlgmr.msra.gmra.mrb[0].mxu0 %v177_v41  ;;  %1611 = vmatprep.mubr.f32.mxu1 %v177_v41  ;;  %v170_v43 = vmul.f32 %v1419_v35, %v162_v42  ;;  %v240_v50 = vrot.slane %v2408_v46, %v239_v36  ;;  %v850_v42 = vld [vmem:[#allocation11 + $0x18] sm:$0xff] }
 0x1a9   :  { %314 = vmatprep.mubr.f32.mxu0 %v2214_v2 }
 0x1aa   :  { %v178_v44 = vadd.f32 %v1420_v38, %v170_v43 }
 0x1ac   :  { %315 = vmatmul.mubr.f32.gmra.mrb[2].mxu0 %v178_v44  ;;  %1612 = vmatmul.mubr.f32.vlgmr.msra.gmra.mrb[0].mxu1 %v178_v44  ;;  %v849_v44 = vld [vmem:[#allocation11 + $0x10] sm:$0xff] }
 0x27b   :  { %v2414_v48 = vpop.f32.mrb[0].mxu0 }
 0x27c   :  { %v312_v49 = vpop.f32.mrb[1].mxu0 }
 0x27d   :  { %v313_v27 = vadd.f32 %v312_v49, %v236_v47 }
 0x27f   :  { %396 = vxpose.xlu0.b32.start.end [1/1] (short) %v313_v27, 128  ;;  %v2417_v51 = vpop.f32.mrb[2].mxu0  ;;  %v1613_v52 = vpop.f32.mrb[0].mxu1 }
 0x280   :  { %v393_v53 = vadd.f32 %v1613_v52, %v240_v50  ;;  %v318_v54 = vpop.f32.mrb[3].mxu0  ;;  %v387_v55 = vpop.f32.mrb[1].mxu1 }
 0x281   :  { %v319_v56 = vadd.f32 %v318_v54, %v236_v47  ;;  %v388_v57 = vadd.f32 %v387_v55, %v240_v50 }
 0x282   :  { %1640 = vmatprep.subr.mxu0 %v393_v53 }
 0x283   :  { %1614 = vmatprep.subr.mxu1 %v388_v57  ;;  %1641 = vmatpush3.msra.mxu0 %v393_v53 }
 0x284   :  { %428 = vxpose.xlu1.b32.start.end [1/1] (short) %v319_v56, 128  ;;  %1615 = vmatpush3.msra.mxu1 %v388_v57  ;;  %v852_v56 = vld [vmem:[#allocation11 + $0x28] sm:$0xff] }
 0x285   :  { %1870 = vmatprep.subr.bf16.mxu1 %v2215_v28  ;;  %1894 = vmatprep.subr.bf16.mxu0 %v2215_v28 }
 0x2ff   :  { %v412_v58 = vpop.trf.xlu0 }
 0x300   :  { %1616 = vmatprep.mubr.msk.f32.mxu1 %vm460_vm1, %v412_v58  ;;  %v851_v58 = vld [vmem:[#allocation11 + $0x20] sm:$0xff] }
 0x303   :  { %v413_v59 = vpop.trf.xlu0 }
 0x304   :  { %v444_v60 = vpop.trf.xlu1  ;;  %1617 = vmatmul.mubr.msk.f32.vlgmr.msra.gmra.mrb[2].mxu1 %vm460_vm1, %v413_v59 }
 0x305   :  { %1642 = vmatprep.mubr.msk.f32.mxu0 %vm460_vm1, %v444_v60 }
 0x307   :  { %v414_v61 = vpop.trf.xlu0 }
 0x308   :  { %v445_v62 = vpop.trf.xlu1  ;;  %1619 = vmatprep.mubr.msk.f32.mxu1 %vm460_vm1, %v414_v61 }
 0x309   :  { %1643 = vmatmul.mubr.msk.f32.vlgmr.msra.gmra.mrb[4].mxu0 %vm460_vm1, %v445_v62 }
 0x30b   :  { %v415_v63 = vpop.trf.xlu0 }
 0x30c   :  { %v446_v0 = vpop.trf.xlu1  ;;  %1620 = vmatmul.mubr.msk.f32.gmra.mrb[4].mxu1 %vm460_vm1, %v415_v63 }
 0x30d   :  { %1645 = vmatprep.mubr.msk.f32.mxu0 %vm460_vm1, %v446_v0 }
 0x30f   :  { %v416_v1 = vpop.trf.xlu0 }
 0x310   :  { %v447_v3 = vpop.trf.xlu1  ;;  %1622 = vmatprep.mubr.msk.f32.mxu1 %vm460_vm1, %v416_v1 }
 0x311   :  { %1646 = vmatmul.mubr.msk.f32.gmra.mrb[6].mxu0 %vm460_vm1, %v447_v3 }
 0x313   :  { %v417_v4 = vpop.trf.xlu0 }
 0x314   :  { %v448_v5 = vpop.trf.xlu1  ;;  %1623 = vmatmul.mubr.msk.f32.gmra.mrb[6].mxu1 %vm460_vm1, %v417_v4 }
 0x315   :  { %1648 = vmatprep.mubr.msk.f32.mxu0 %vm460_vm1, %v448_v5  ;;  %v854_v5 = vld [vmem:[#allocation11 + $0x38] sm:$0xff] }
 0x317   :  { %v418_v6 = vpop.trf.xlu0 }
 0x318   :  { %v449_v7 = vpop.trf.xlu1  ;;  %1625 = vmatprep.mubr.msk.f32.mxu1 %vm460_vm1, %v418_v6 }
 0x319   :  { %1649 = vmatmul.mubr.msk.f32.gmra.mrb[8].mxu0 %vm460_vm1, %v449_v7  ;;  %v853_v7 = vld [vmem:[#allocation11 + $0x30] sm:$0xff] }
 0x31b   :  { %v419_v8 = vpop.trf.xlu0 }
 0x31c   :  { %v450_v9 = vpop.trf.xlu1  ;;  %1626 = vmatmul.mubr.msk.f32.gmra.mrb[8].mxu1 %vm460_vm1, %v419_v8 }
 0x31d   :  { %1651 = vmatprep.mubr.msk.f32.mxu0 %vm460_vm1, %v450_v9 }
 0x31f   :  { %v420_v10 = vpop.trf.xlu0 }
 0x320   :  { %v451_v11 = vpop.trf.xlu1  ;;  %1628 = vmatprep.mubr.msk.f32.mxu1 %vm460_vm1, %v420_v10 }
 0x321   :  { %1652 = vmatmul.mubr.msk.f32.gmra.mrb[10].mxu0 %vm460_vm1, %v451_v11 }
 0x323   :  { %v421_v12 = vpop.trf.xlu0 }
 0x324   :  { %v452_v13 = vpop.trf.xlu1  ;;  %1629 = vmatmul.mubr.msk.f32.gmra.mrb[10].mxu1 %vm460_vm1, %v421_v12 }
 0x325   :  { %1654 = vmatprep.mubr.msk.f32.mxu0 %vm460_vm1, %v452_v13 }
 0x327   :  { %v422_v14 = vpop.trf.xlu0 }
 0x328   :  { %v453_v15 = vpop.trf.xlu1  ;;  %1631 = vmatprep.mubr.msk.f32.mxu1 %vm460_vm1, %v422_v14 }
 0x329   :  { %1655 = vmatmul.mubr.msk.f32.gmra.mrb[12].mxu0 %vm460_vm1, %v453_v15 }
 0x32b   :  { %v423_v16 = vpop.trf.xlu0 }
 0x32c   :  { %v454_v17 = vpop.trf.xlu1  ;;  %1632 = vmatmul.mubr.msk.f32.gmra.mrb[12].mxu1 %vm460_vm1, %v423_v16 }
 0x32d   :  { %1657 = vmatprep.mubr.msk.f32.mxu0 %vm460_vm1, %v454_v17  ;;  %v856_v17 = vld [vmem:[#allocation11 + $0x48] sm:$0xff] }
 0x32f   :  { %v424_v18 = vpop.trf.xlu0 }
 0x330   :  { %v455_v19 = vpop.trf.xlu1  ;;  %1634 = vmatprep.mubr.msk.f32.mxu1 %vm460_vm1, %v424_v18 }
 0x331   :  { %1658 = vmatmul.mubr.msk.f32.gmra.mrb[14].mxu0 %vm460_vm1, %v455_v19  ;;  %v855_v19 = vld [vmem:[#allocation11 + $0x40] sm:$0xff] }
 0x333   :  { %v425_v20 = vpop.trf.xlu0 }
 0x334   :  { %v456_v21 = vpop.trf.xlu1  ;;  %1635 = vmatmul.mubr.msk.f32.gmra.mrb[14].mxu1 %vm460_vm1, %v425_v20 }
 0x335   :  { %1660 = vmatprep.mubr.msk.f32.mxu0 %vm460_vm1, %v456_v21 }
 0x337   :  { %v426_v22 = vpop.trf.xlu0 }
 0x338   :  { %v457_v23 = vpop.trf.xlu1  ;;  %1637 = vmatprep.mubr.msk.f32.mxu1 %vm460_vm1, %v426_v22 }
 0x339   :  { %1661 = vmatmul.mubr.msk.f32.gmra.mrb[16].mxu0 %vm460_vm1, %v457_v23 }
 0x33b   :  { %v427_v24 = vpop.trf.xlu0 }
 0x33c   :  { %v458_v25 = vpop.trf.xlu1  ;;  %1638 = vmatmul.mubr.msk.f32.gmra.mrb[16].mxu1 %vm460_vm1, %v427_v24 }
 0x33d   :  { %1663 = vmatprep.mubr.msk.f32.mxu0 %vm460_vm1, %v458_v25  ;;  %1698 = vmatprep.mubr.msk.f32.mxu1 %vm2216_vm2, %v2214_v2 }
 0x340   :  { %v459_v26 = vpop.trf.xlu1 }
 0x341   :  { %1664 = vmatmul.mubr.msk.f32.gmra.mrb[18].mxu0 %vm460_vm1, %v459_v26 }
 0x342   :  { %1733 = vmatprep.mubr.msk.f32.mxu0 %vm2216_vm2, %v2214_v2 }
 0x3d7   :  { %v1618_v32 = vpop.f32.mrb[2].mxu1 }
 0x3d8   :  { %v864_v34 = vmul.f32 %v1618_v32, %v848_v29  ;;  %v575_v35 = vpop.f32.mrb[3].mxu1  ;;  %v858_v32 = vld [vmem:[#allocation11 + $0x58] sm:$0xff] }
 0x3d9   :  { %v863_v37 = vmul.f32 %v847_v30, %v575_v35  ;;  %v857_v35 = vld [vmem:[#allocation11 + $0x50] sm:$0xff] }
 0x3db   :  { %v1871_v38 = vpack.c.bf16 %v864_v34, %v863_v37 }
 0x3dc   :  { %v1644_v39 = vpop.f32.mrb[4].mxu0 }
 0x3dd   :  { %v880_v40 = vmul.f32 %v1644_v39, %v848_v29  ;;  %v768_v41 = vpop.f32.mrb[5].mxu0  ;;  %1872 = vmatpush3.bf16.msra.mxu1 %v1871_v38 }
 0x3de   :  { %v879_v43 = vmul.f32 %v847_v30, %v768_v41  ;;  %1873 = vmatprep.subr.bf16.mxu1 %v2215_v28 }
 0x3df   :  { %v1621_v36 = vpop.f32.mrb[4].mxu1 }
 0x3e0   :  { %v1895_v47 = vpack.c.bf16 %v880_v40, %v879_v43  ;;  %v866_v49 = vmul.f32 %v1621_v36, %v850_v42  ;;  %v585_v50 = vpop.f32.mrb[5].mxu1 }
 0x3e1   :  { %v865_v27 = vmul.f32 %v849_v44, %v585_v50  ;;  %v859_v50 = vld [vmem:[#allocation11 + $0x60] sm:$0xff] }
 0x3e2   :  { %1896 = vmatpush3.bf16.msra.mxu0 %v1895_v47  ;;  %v860_v47 = vld [vmem:[#allocation11 + $0x68] sm:$0xff] }
 0x3e3   :  { %v1874_v52 = vpack.c.bf16 %v866_v49, %v865_v27  ;;  %1897 = vmatprep.subr.bf16.mxu0 %v2215_v28 }
 0x3e4   :  { %v1647_v53 = vpop.f32.mrb[6].mxu0 }
 0x3e5   :  { %v882_v54 = vmul.f32 %v1647_v53, %v850_v42  ;;  %v778_v55 = vpop.f32.mrb[7].mxu0  ;;  %1875 = vmatpush3.bf16.msra.mxu1 %v1874_v52 }
 0x3e6   :  { %v881_v57 = vmul.f32 %v849_v44, %v778_v55  ;;  %1876 = vmatprep.subr.bf16.mxu1 %v2215_v28 }
 0x3e7   :  { %v1624_v59 = vpop.f32.mrb[6].mxu1 }
 0x3e8   :  { %v1898_v60 = vpack.c.bf16 %v882_v54, %v881_v57  ;;  %v868_v61 = vmul.f32 %v1624_v59, %v852_v56  ;;  %v595_v62 = vpop.f32.mrb[7].mxu1 }
 0x3e9   :  { %v867_v63 = vmul.f32 %v851_v58, %v595_v62 }
 0x3ea   :  { %1899 = vmatpush3.bf16.msra.mxu0 %v1898_v60  ;;  %v862_v60 = vld [vmem:[#allocation11 + $0x78] sm:$0xff] }
 0x3eb   :  { %v1877_v0 = vpack.c.bf16 %v868_v61, %v867_v63  ;;  %1900 = vmatprep.subr.bf16.mxu0 %v2215_v28  ;;  %v231_v61 = vsub.s32 0, %v2402_v45  ;;  %v861_v63 = vld [vmem:[#allocation11 + $0x70] sm:$0xff] }
 0x3ec   :  { %v1650_v1 = vpop.f32.mrb[8].mxu0 }
 0x3ed   :  { %v884_v3 = vmul.f32 %v1650_v1, %v852_v56  ;;  %v788_v4 = vpop.f32.mrb[9].mxu0  ;;  %1878 = vmatpush3.bf16.msra.mxu1 %v1877_v0  ;;  %v1035_v1 = vld [vmem:[#allocation7] sm:$0xff] }
 0x3ee   :  { %v883_v6 = vmul.f32 %v851_v58, %v788_v4  ;;  %1879 = vmatprep.subr.bf16.mxu1 %v2215_v28 }
 0x3ef   :  { %v1627_v8 = vpop.f32.mrb[8].mxu1 }
 0x3f0   :  { %v1901_v9 = vpack.c.bf16 %v884_v3, %v883_v6  ;;  %v870_v10 = vmul.f32 %v1627_v8, %v854_v5  ;;  %v605_v11 = vpop.f32.mrb[9].mxu1  ;;  %v1036_v3 = vld [vmem:[#allocation7 + $0x8] sm:$0xff]  ;;  %v232_v8 = vrot.slane %v2408_v46, %v231_v61 }
 0x3f1   :  { %v869_v12 = vmul.f32 %v853_v7, %v605_v11  ;;  %v1037_v11 = vld [vmem:[#allocation7 + $0x10] sm:$0xff] }
 0x3f2   :  { %1902 = vmatpush3.bf16.msra.mxu0 %v1901_v9  ;;  %v1918_v9 = vpack.c.bf16 %v1036_v3, %v1035_v1  ;;  %v1147_v1 = vld [vmem:[#allocation8 + $0x70] sm:$0xff]  ;;  %v1150_v3 = vld [vmem:[#allocation8 + $0x88] sm:$0xff] }
 0x3f3   :  { %v1880_v13 = vpack.c.bf16 %v870_v10, %v869_v12  ;;  %1903 = vmatprep.subr.bf16.mxu0 %v2215_v28  ;;  %v1038_v12 = vld [vmem:[#allocation7 + $0x18] sm:$0xff] }
 0x3f4   :  { %v1653_v14 = vpop.f32.mrb[10].mxu0 }
 0x3f5   :  { %v886_v15 = vmul.f32 %v1653_v14, %v854_v5  ;;  %v798_v16 = vpop.f32.mrb[11].mxu0  ;;  %1881 = vmatpush3.bf16.msra.mxu1 %v1880_v13 }
 0x3f6   :  { %v885_v18 = vmul.f32 %v853_v7, %v798_v16  ;;  %1882 = vmatprep.subr.bf16.mxu1 %v2215_v28  ;;  %v311_v16 = vadd.f32 %v2414_v48, %v232_v8  ;;  %v1043_v48 = vld [vmem:[#allocation7 + $0x40] sm:$0xff] }
 0x3f7   :  { %v1630_v20 = vpop.f32.mrb[10].mxu1 }
 0x3f8   :  { %v1904_v21 = vpack.c.bf16 %v886_v15, %v885_v18  ;;  %v872_v22 = vmul.f32 %v1630_v20, %v856_v17  ;;  %v615_v23 = vpop.f32.mrb[11].mxu1  ;;  %v1922_v18 = vpack.c.bf16 %v1038_v12, %v1037_v11  ;;  %v1040_v20 = vld [vmem:[#allocation7 + $0x28] sm:$0xff] }
 0x3f9   :  { %v871_v24 = vmul.f32 %v855_v19, %v615_v23  ;;  %v1042_v23 = vld [vmem:[#allocation7 + $0x38] sm:$0xff] }
 0x3fa   :  { %1905 = vmatpush3.bf16.msra.mxu0 %v1904_v21 }
 0x3fb   :  { %v1883_v25 = vpack.c.bf16 %v872_v22, %v871_v24  ;;  %1906 = vmatprep.subr.bf16.mxu0 %v2215_v28  ;;  %v1041_v22 = vld [vmem:[#allocation7 + $0x30] sm:$0xff] }
 0x3fc   :  { %v1656_v26 = vpop.f32.mrb[12].mxu0  ;;  %v1930_v24 = vpack.c.bf16 %v1042_v23, %v1041_v22 }
 0x3fd   :  { %v888_v29 = vmul.f32 %v1656_v26, %v856_v17  ;;  %v808_v30 = vpop.f32.mrb[13].mxu0  ;;  %1884 = vmatpush3.bf16.msra.mxu1 %v1883_v25  ;;  %v1044_v25 = vld [vmem:[#allocation7 + $0x48] sm:$0xff] }
 0x3fe   :  { %v887_v34 = vmul.f32 %v855_v19, %v808_v30  ;;  %1885 = vmatprep.subr.bf16.mxu1 %v2215_v28  ;;  %v1039_v19 = vld [vmem:[#allocation7 + $0x20] sm:$0xff]  ;;  %v1934_v26 = vpack.c.bf16 %v1044_v25, %v1043_v48  ;;  %v1046_v30 = vld [vmem:[#allocation7 + $0x58] sm:$0xff] }
 0x3ff   :  { %v1633_v37 = vpop.f32.mrb[12].mxu1  ;;  %v1926_v46 = vpack.c.bf16 %v1040_v20, %v1039_v19  ;;  %v1157_v19 = vld [vmem:[#allocation8 + $0xc0] sm:$0xff]  ;;  %v1159_v20 = vld [vmem:[#allocation8 + $0xd0] sm:$0xff]  ;;  %v1164_v48 = vld [vmem:[#allocation8 + $0xf8] sm:$0xff] }
 0x400   :  { %v1907_v38 = vpack.c.bf16 %v888_v29, %v887_v34  ;;  %v874_v39 = vmul.f32 %v1633_v37, %v858_v32  ;;  %v625_v40 = vpop.f32.mrb[13].mxu1  ;;  %v1045_v29 = vld [vmem:[#allocation7 + $0x50] sm:$0xff]  ;;  %v1047_v34 = vld [vmem:[#allocation7 + $0x60] sm:$0xff] }
 0x401   :  { %v873_v41 = vmul.f32 %v857_v35, %v625_v40  ;;  %v1049_v37 = vld [vmem:[#allocation7 + $0x70] sm:$0xff]  ;;  %v1134_v40 = vld [vmem:[#allocation8 + $0x8] sm:$0xff] }
 0x402   :  { %1908 = vmatpush3.bf16.msra.mxu0 %v1907_v38  ;;  %v1050_v38 = vld [vmem:[#allocation7 + $0x78] sm:$0xff] }
 0x403   :  { %v1886_v42 = vpack.c.bf16 %v874_v39, %v873_v41  ;;  %1909 = vmatprep.subr.bf16.mxu0 %v2215_v28  ;;  %v1946_v39 = vpack.c.bf16 %v1050_v38, %v1049_v37  ;;  %v1136_v41 = vld [vmem:[#allocation8 + $0x18] sm:$0xff] }
 0x404   :  { %v1659_v43 = vpop.f32.mrb[14].mxu0  ;;  %v1257_v37 = vld [vmem:[#allocation10 + $0x18] sm:$0xff] }
 0x405   :  { %v890_v44 = vmul.f32 %v1659_v43, %v858_v32  ;;  %v818_v36 = vpop.f32.mrb[15].mxu0  ;;  %1887 = vmatpush3.bf16.msra.mxu1 %v1886_v42  ;;  %v1938_v32 = vpack.c.bf16 %v1046_v30, %v1045_v29  ;;  %v1133_v42 = vld [vmem:[#allocation8] sm:$0xff]  ;;  %v1950_v43 = vpack.c.bf16 %v1136_v41, %v1134_v40  ;;  %v1163_v29 = vld [vmem:[#allocation8 + $0xf0] sm:$0xff]  ;;  %v1259_v40 = vld [vmem:[#allocation10 + $0x28] sm:$0xff] }
 0x406   :  { %v889_v49 = vmul.f32 %v857_v35, %v818_v36  ;;  %1888 = vmatprep.subr.bf16.mxu1 %v2215_v28  ;;  %v1138_v36 = vld [vmem:[#allocation8 + $0x28] sm:$0xff] }
 0x407   :  { %v1636_v27 = vpop.f32.mrb[14].mxu1 }
 0x408   :  { %v1910_v52 = vpack.c.bf16 %v890_v44, %v889_v49  ;;  %v876_v53 = vmul.f32 %v1636_v27, %v860_v47  ;;  %v635_v54 = vpop.f32.mrb[15].mxu1  ;;  %v1135_v44 = vld [vmem:[#allocation8 + $0x10] sm:$0xff]  ;;  %v1137_v27 = vld [vmem:[#allocation8 + $0x20] sm:$0xff] }
 0x409   :  { %v875_v55 = vmul.f32 %v859_v50, %v635_v54  ;;  %v1952_v49 = vpack.c.bf16 %v1135_v44, %v1133_v42  ;;  %v1144_v54 = vld [vmem:[#allocation8 + $0x58] sm:$0xff]  ;;  %v1260_v42 = vld [vmem:[#allocation10 + $0x30] sm:$0xff] }
 0x40a   :  { %1911 = vmatpush3.bf16.msra.mxu0 %v1910_v52  ;;  %v1139_v52 = vld [vmem:[#allocation8 + $0x30] sm:$0xff] }
 0x40b   :  { %v1889_v56 = vpack.c.bf16 %v876_v53, %v875_v55  ;;  %1912 = vmatprep.subr.bf16.mxu0 %v2215_v28  ;;  %v1142_v53 = vld [vmem:[#allocation8 + $0x48] sm:$0xff]  ;;  %v1956_v55 = vpack.c.bf16 %v1139_v52, %v1137_v27  ;;  %v1265_v27 = vld [vmem:[#allocation10 + $0x58] sm:$0xff] }
 0x40c   :  { %v1662_v57 = vpop.f32.mrb[16].mxu0 }
 0x40d   :  { %v892_v58 = vmul.f32 %v1662_v57, %v860_v47  ;;  %v828_v59 = vpop.f32.mrb[17].mxu0  ;;  %1890 = vmatpush3.bf16.msra.mxu1 %v1889_v56  ;;  %v1140_v47 = vld [vmem:[#allocation8 + $0x38] sm:$0xff]  ;;  %v1958_v56 = vpack.c.bf16 %v1144_v54, %v1142_v53  ;;  %v1141_v57 = vld [vmem:[#allocation8 + $0x40] sm:$0xff]  ;;  %v1453_v53 = vld [vmem:[%s2519_s6] ss:$0 sm:$0xff] }
 0x40e   :  { %v891_v62 = vmul.f32 %v859_v50, %v828_v59  ;;  %1891 = vmatprep.subr.bf16.mxu1 %v2215_v28  ;;  %v1954_v50 = vpack.c.bf16 %v1140_v47, %v1138_v36  ;;  %v1146_v59 = vld [vmem:[#allocation8 + $0x68] sm:$0xff]  ;;  %v1262_v36 = vld [vmem:[#allocation10 + $0x40] sm:$0xff] }
 0x40f   :  { %v1639_v0 = vpop.f32.mrb[16].mxu1  ;;  %v1263_v47 = vld [vmem:[#allocation10 + $0x48] sm:$0xff] }
 0x410   :  { %v1913_v4 = vpack.c.bf16 %v892_v58, %v891_v62  ;;  %v878_v5 = vmul.f32 %v1639_v0, %v862_v60  ;;  %v645_v6 = vpop.f32.mrb[17].mxu1  ;;  %v1143_v58 = vld [vmem:[#allocation8 + $0x50] sm:$0xff]  ;;  %v1145_v0 = vld [vmem:[#allocation8 + $0x60] sm:$0xff] }
 0x411   :  { %v877_v7 = vmul.f32 %v861_v63, %v645_v6  ;;  %v1960_v62 = vpack.c.bf16 %v1143_v58, %v1141_v57  ;;  %v1266_v58 = vld [vmem:[#allocation10 + $0x60] sm:$0xff] }
 0x412   :  { %1914 = vmatpush3.bf16.msra.mxu0 %v1913_v4  ;;  %v1152_v4 = vld [vmem:[#allocation8 + $0x98] sm:$0xff] }
 0x413   :  { %v1892_v10 = vpack.c.bf16 %v878_v5, %v877_v7  ;;  %1915 = vmatprep.subr.bf16.mxu0 %v2215_v28  ;;  %v317_v28 = vadd.f32 %v2417_v51, %v232_v8  ;;  %v1048_v51 = vld [vmem:[#allocation7 + $0x68] sm:$0xff]  ;;  %v1964_v5 = vpack.c.bf16 %v1147_v1, %v1145_v0  ;;  %v1966_v6 = vpack.c.bf16 %v1152_v4, %v1150_v3  ;;  %v1149_v7 = vld [vmem:[#allocation8 + $0x80] sm:$0xff]  ;;  %v1151_v8 = vld [vmem:[#allocation8 + $0x90] sm:$0xff] }
 0x414   :  { %v1665_v13 = vpop.f32.mrb[18].mxu0  ;;  %v1942_v35 = vpack.c.bf16 %v1048_v51, %v1047_v34  ;;  %v1968_v11 = vpack.c.bf16 %v1151_v8, %v1149_v7  ;;  %v1255_v34 = vld [vmem:[#allocation10 + $0x8] sm:$0xff]  ;;  %v1256_v51 = vld [vmem:[#allocation10 + $0x10] sm:$0xff] }
 0x415   :  { %v894_v14 = vmul.f32 %v1665_v13, %v862_v60  ;;  %v838_v15 = vpop.f32.mrb[19].mxu0  ;;  %1893 = vmatpush3.bf16.msra.mxu1 %v1892_v10  ;;  %v1148_v60 = vld [vmem:[#allocation8 + $0x78] sm:$0xff]  ;;  %v1153_v13 = vld [vmem:[#allocation8 + $0xa0] sm:$0xff]  ;;  %v1986_v38 = vpack.c.bf16 %v1257_v37, %v1256_v51  ;;  %v1165_v1 = vld [vmem:[%s2521_s8] sm:$0x3] }
 0x416   :  { %v893_v17 = vmul.f32 %v861_v63, %v838_v15  ;;  %1919 = vmatprep.subr.bf16.mxu1 %v1918_v9  ;;  %v1962_v63 = vpack.c.bf16 %v1148_v60, %v1146_v59  ;;  %v1156_v10 = vld [vmem:[#allocation8 + $0xb8] sm:$0xff]  ;;  %v1158_v15 = vld [vmem:[#allocation8 + $0xc8] sm:$0xff]  ;;  %v1174_v3 = vrot.slane %v1165_v1, %v235_v31 }
 0x417   :  { %v1267_v59 = vld [vmem:[#allocation10 + $0x68] sm:$0xff] }
 0x418   :  { %v1916_v21 = vpack.c.bf16 %v894_v14, %v893_v17  ;;  %1699 = vmatmul.mubr.f32.vlgmr.msra.gmra.mrb[18].mxu1 %v311_v16  ;;  %v1155_v14 = vld [vmem:[#allocation8 + $0xb0] sm:$0xff]  ;;  %v1160_v16 = vld [vmem:[#allocation8 + $0xd8] sm:$0xff]  ;;  %v2006_v60 = vpack.c.bf16 %v1267_v59, %v1266_v58 }
 0x419   :  { %1921 = vmatpush3.bf16.msra.mxu1 %v1918_v9  ;;  %v1154_v9 = vld [vmem:[#allocation8 + $0xa8] sm:$0xff]  ;;  %v1972_v17 = vpack.c.bf16 %v1155_v14, %v1153_v13 }
 0x41a   :  { %1917 = vmatpush3.bf16.msra.mxu0 %v1916_v21  ;;  %1923 = vmatprep.subr.bf16.mxu1 %v1922_v18  ;;  %v1970_v12 = vpack.c.bf16 %v1156_v10, %v1154_v9  ;;  %v1976_v21 = vpack.c.bf16 %v1159_v20, %v1157_v19  ;;  %v1170_v9 = vrot.slane %v1165_v1, %v231_v61  ;;  %v1454_v10 = vld [vmem:[%s2523_s10] ss:$0 sm:$0xff] }
 0x41b   :  { %1951 = vmatprep.subr.bf16.mxu0 %v1950_v43  ;;  %v1261_v43 = vld [vmem:[#allocation10 + $0x38] sm:$0xff] }
 0x41c   :  { %v1994_v44 = vpack.c.bf16 %v1261_v43, %v1260_v42 }
 0x41d   :  { %1734 = vmatmul.mubr.f32.vlgmr.msra.gmra.mrb[20].mxu0 %v317_v28  ;;  %1925 = vmatpush3.bf16.msra.mxu1 %v1922_v18  ;;  %v1974_v18 = vpack.c.bf16 %v1160_v16, %v1158_v15 }
 0x41e   :  { %1927 = vmatprep.subr.bf16.mxu1 %v1926_v46  ;;  %1241 = vmatprep.mubr.f32.mxu0 %v2214_v2 }
 0x41f   :  { %1953 = vmatpush1.bf16.msra.mxu0 %v1952_v49  ;;  %v1998_v49 = vpack.c.bf16 %v1263_v47, %v1262_v36 }
 0x420   :  { %1955 = vmatprep.subr.bf16.mxu0 %v1954_v50  ;;  %v1264_v50 = vld [vmem:[#allocation10 + $0x50] sm:$0xff] }
 0x421   :  { %1929 = vmatpush3.bf16.msra.mxu1 %v1926_v46  ;;  %v2002_v52 = vpack.c.bf16 %v1265_v27, %v1264_v50 }
 0x422   :  { %1931 = vmatprep.subr.bf16.mxu1 %v1930_v24 }
 0x423   :  { %1957 = vmatpush1.bf16.msra.mxu0 %v1956_v55 }
 0x424   :  { %1959 = vmatprep.subr.bf16.mxu0 %v1958_v56 }
 0x425   :  { %1933 = vmatpush3.bf16.msra.mxu1 %v1930_v24  ;;  %v1162_v24 = vld [vmem:[#allocation8 + $0xe8] sm:$0xff] }
 0x426   :  { %1935 = vmatprep.subr.bf16.mxu1 %v1934_v26  ;;  %v1978_v25 = vpack.c.bf16 %v1164_v48, %v1162_v24 }
 0x427   :  { %1961 = vmatpush1.bf16.msra.mxu0 %v1960_v62  ;;  %v1268_v62 = vld [vmem:[#allocation10 + $0x70] sm:$0xff] }
 0x428   :  { %1963 = vmatprep.subr.bf16.mxu0 %v1962_v63  ;;  %v1269_v63 = vld [vmem:[#allocation10 + $0x78] sm:$0xff] }
 0x429   :  { %1937 = vmatpush3.bf16.msra.mxu1 %v1934_v26  ;;  %v1161_v26 = vld [vmem:[#allocation8 + $0xe0] sm:$0xff]  ;;  %v2010_v0 = vpack.c.bf16 %v1269_v63, %v1268_v62 }
 0x42a   :  { %1939 = vmatprep.subr.bf16.mxu1 %v1938_v32  ;;  %v1980_v30 = vpack.c.bf16 %v1163_v29, %v1161_v26 }
 0x42b   :  { %1965 = vmatpush1.bf16.msra.mxu0 %v1964_v5 }
 0x42c   :  { %1967 = vmatprep.subr.bf16.mxu0 %v1966_v6 }
 0x42d   :  { %1941 = vmatpush3.bf16.msra.mxu1 %v1938_v32  ;;  %v1254_v32 = vld [vmem:[#allocation10] sm:$0xff] }
 0x42e   :  { %1943 = vmatprep.subr.bf16.mxu1 %v1942_v35 }
 0x42f   :  { %1969 = vmatpush1.bf16.msra.mxu0 %v1968_v11 }
 0x430   :  { %1971 = vmatprep.subr.bf16.mxu0 %v1970_v12 }
 0x431   :  { %1945 = vmatpush3.bf16.msra.mxu1 %v1942_v35  ;;  %v1982_v35 = vpack.c.bf16 %v1255_v34, %v1254_v32  ;;  %v1455_v34 = vld [vmem:[%s2524_s11] ss:$0 sm:$0xff] }
 0x432   :  { %1947 = vmatprep.subr.bf16.mxu1 %v1946_v39 }
 0x433   :  { %1973 = vmatpush1.bf16.msra.mxu0 %v1972_v17 }
 0x434   :  { %1975 = vmatprep.subr.bf16.mxu0 %v1974_v18 }
 0x435   :  { %1949 = vmatpush3.bf16.msra.mxu1 %v1946_v39  ;;  %v1258_v39 = vld [vmem:[#allocation10 + $0x20] sm:$0xff] }
 0x436   :  { %1983 = vmatprep.subr.bf16.mxu1 %v1982_v35  ;;  %v1990_v41 = vpack.c.bf16 %v1259_v40, %v1258_v39 }
 0x437   :  { %1977 = vmatpush1.bf16.msra.mxu0 %v1976_v21 }
 0x438   :  { %1979 = vmatprep.subr.bf16.mxu0 %v1978_v25 }
 0x43b   :  { %1981 = vmatpush1.bf16.msra.mxu0 %v1980_v30 }
 0x4eb   :  { %v961_v46 = vpop.f32.mrb[18].mxu1 }
 0x4ec   :  { %v1700_v28 = vpop.f32.mrb[19].mxu1  ;;  %1768 = vmatprep.mubr.f32.mxu1 %v961_v46 }
 0x4f0   :  { %v1031_v22 = vpop.f32.mrb[20].mxu0 }
 0x4f1   :  { %v1735_v23 = vpop.f32.mrb[21].mxu0  ;;  %1769 = vmatmul.mubr.f32.vlgmr.msra.gmra.mrb[20].mxu1 %v1031_v22 }
 0x4f2   :  { %1985 = vmatpush3.bf16.msra.mxu1 %v1982_v35 }
 0x4f3   :  { %1987 = vmatprep.subr.bf16.mxu1 %v1986_v38 }
 0x4f6   :  { %1989 = vmatpush3.bf16.msra.mxu1 %v1986_v38 }
 0x4f7   :  { %1991 = vmatprep.subr.bf16.mxu1 %v1990_v41 }
 0x4fa   :  { %1993 = vmatpush3.bf16.msra.mxu1 %v1990_v41 }
 0x4fb   :  { %1995 = vmatprep.subr.bf16.mxu1 %v1994_v44 }
 0x4fe   :  { %1997 = vmatpush3.bf16.msra.mxu1 %v1994_v44 }
 0x4ff   :  { %1999 = vmatprep.subr.bf16.mxu1 %v1998_v49 }
 0x502   :  { %2001 = vmatpush3.bf16.msra.mxu1 %v1998_v49 }
 0x503   :  { %2003 = vmatprep.subr.bf16.mxu1 %v2002_v52 }
 0x506   :  { %2005 = vmatpush3.bf16.msra.mxu1 %v2002_v52 }
 0x507   :  { %2007 = vmatprep.subr.bf16.mxu1 %v2006_v60 }
 0x50a   :  { %2009 = vmatpush3.bf16.msra.mxu1 %v2006_v60 }
 0x50b   :  { %2011 = vmatprep.subr.bf16.mxu1 %v2010_v0 }
 0x50e   :  { %2013 = vmatpush3.bf16.msra.mxu1 %v2010_v0 }
 0x5c4   :  { %v1770_v54 = vpop.f32.mrb[20].mxu1 }
 0x5c5   :  { %v1124_v55 = vpop.f32.mrb[21].mxu1  ;;  %v1130_v57 = vadd.f32 %v1770_v54, %v1453_v53 }
 0x5c6   :  { %v1125_v56 = vadd.f32 %v1453_v53, %v1124_v55 }
 0x5c8   :  { %1242 = vmatmul.mubr.f32.vlgmr.msra.gmra.mrb[22].mxu0 %v1125_v56 }
 0x5c9   :  { %1247 = vmatprep.mubr.f32.mxu0 %v2214_v2 }
 0x5cc   :  { %1248 = vmatmul.mubr.f32.gmra.mrb[24].mxu0 %v1130_v57 }
 0x69b   :  { %v1243_v2 = vpop.f32.mrb[22].mxu0 }
 0x69c   :  { %v1245_v4 = vpop.f32.mrb[23].mxu0  ;;  %v1244_v31 = vadd.f32 %v1243_v2, %v1170_v9 }
 0x69d   :  { %v1246_v5 = vadd.f32 %v1245_v4, %v1174_v3 }
 0x69f   :  { %v1249_v6 = vpop.f32.mrb[24].mxu0  ;;  %1803 = vmatprep.mubr.f32.mxu1 %v1246_v5 }
 0x6a0   :  { %v1251_v7 = vpop.f32.mrb[25].mxu0  ;;  %v1250_v12 = vadd.f32 %v1249_v6, %v1170_v9 }
 0x6a1   :  { %v1252_v8 = vadd.f32 %v1251_v7, %v1174_v3 }
 0x6a3   :  { %1804 = vmatmul.mubr.f32.vlgmr.msra.gmra.mrb[22].mxu1 %v1252_v8 }
 0x776   :  { %v1805_v11 = vpop.f32.mrb[22].mxu1 }
 0x777   :  { %v1349_v13 = vadd.f32 %v1805_v11, %v1454_v10  ;;  %v1343_v14 = vpop.f32.mrb[23].mxu1 }
 0x778   :  { %v1344_v15 = vadd.f32 %v1454_v10, %v1343_v14 }
 0x779   :  { %v1353_v16 = vadd.f32 %v1349_v13, %v1250_v12 }
 0x77a   :  { %v1352_v17 = vadd.f32 %v1344_v15, %v1244_v31 }
 0x77b   :  { %1358 = vadd.xlane.f32.xlu1 %v1353_v16 }
 0x77c   :  { %1356 = vadd.xlane.f32.xlu0 %v1352_v17 }
 0x808   :  { %v1359_v18 = vpop.xlane.xlu1 %1358 }
 0x809   :  { %v1361_v19 = vmul.f32 0.03125, %v1359_v18  ;;  %v1357_v20 = vpop.xlane.xlu0 %1356 }
 0x80a   :  { %v1360_v21 = vmul.f32 0.03125, %v1357_v20 }
 0x80b   :  { %v1363_v45 = vsub.f32 %v1353_v16, %v1361_v19 }
 0x80c   :  { %v1362_v61 = vsub.f32 %v1352_v17, %v1360_v21 }
 0x80d   :  { %v1365_v46 = vmul.f32 %v1363_v45, %v1363_v45 }
 0x80e   :  { %v1364_v28 = vmul.f32 %v1362_v61, %v1362_v61 }
 0x80f   :  { %v1367_v22 = vmul.f32 %v2382_v33, %v1365_v46 }
 0x810   :  { %v1366_v23 = vmul.f32 %v2382_v33, %v1364_v28  ;;  %v1456_v33 = vld [vmem:[%s2525_s12] ss:$0 sm:$0xff] }
 0x811   :  { %1370 = vadd.xlane.f32.xlu1 %v1367_v22 }
 0x812   :  { %1368 = vadd.xlane.f32.xlu0 %v1366_v23 }
 0x89e   :  { %v1371_v24 = vpop.xlane.xlu1 %1370 }
 0x89f   :  { %v1373_v48 = vmul.f32 0.03125, %v1371_v24  ;;  %v1369_v25 = vpop.xlane.xlu0 %1368 }
 0x8a0   :  { %v1372_v26 = vmul.f32 0.03125, %v1369_v25 }
 0x8a1   :  { %v1375_v29 = vadd.f32 1e-05, %v1373_v48 }
 0x8a2   :  { %v1374_v30 = vadd.f32 1e-05, %v1372_v26 }
 0x8a3   :  { %2034 = vrsqrt.f32 %v1375_v29 }
 0x8a4   :  { %2036 = vrsqrt.f32 %v1374_v30 }
 0x8ad   :  { %v2035_v32 = vpop.eup %2034 }
 0x8ae   :  { %v2037_v51 = vpop.eup %2036  ;;  %v1379_v35 = vmul.f32 %v2035_v32, %v1363_v45 }
 0x8af   :  { %v1378_v37 = vmul.f32 %v2037_v51, %v1362_v61 }
 0x8b0   :  { %v1387_v38 = vmul.f32 %v1455_v34, %v1379_v35 }
 0x8b1   :  { %v1386_v39 = vmul.f32 %v1455_v34, %v1378_v37 }
 0x8b2   :  { %v1395_v40 = vadd.f32 %v1456_v33, %v1387_v38 }
 0x8b3   :  { %v1394_v41 = vadd.f32 %v1456_v33, %v1386_v39 }
 0x8b4   :  { %1397 = vst [vmem:[#allocation13 + $0x8] sm:$0xff] %v1395_v40 }
 0x8b5   :  { %1396 = vst [vmem:[#allocation13] sm:$0xff] %v1394_v41 }
 0x8b6   :  { %2181 = shalt.err (!%p2178_p10)
}
 0x8b7   :  { %s2182_s12 = scalar_lea.hbm %s2527_s14, 256 }
 0x8b8   :  { %p2183_p11 = scmp.ne.s32.totalorder %s2527_s14, %s2182_s12  ;;  %p2186_p12 = scmp.lt.u32.totalorder %s2182_s12, %s2527_s14 }
 0x8ba   :  { %p2188_p13 = pnand %p2186_p12, %p2183_p11 }
 0x8bc   :  { %2191 = shalt.err (!%p2188_p13)
}
 0x8bd   :  { %1409 = dma.vmem_to_hbm [thread:$0]  %s1404_s17, 256, %s2527_s14, [#allocation4], %s2209_s7, %s2209_s7, %s2210_s28  }
 0x8be   :  { %2200 = dma.done.wait [#allocation4], 256  }
 0x8bf   :  { %2201 = vsyncadd [#allocation4], 4294967040 }
 0x8c0   :  { %1413 = vsyncpa [#allocation3], 1 }
 0x8c1   :  { %1414 = vsyncpa [#allocation6], 1 }
 0x8c2   :  { %1415 = vsyncpa [#allocation9], 1 }
 0x8c3   :  { %1416 = vsyncpa [#allocation12], 1 }
 0x8c4   :  { %1417 = vsyncpa [#allocation4], 1 }

</bundles_post_ra>
